<compile_context>
chip_gen: v7x
topology: tpu7x:2x2x1
jax: 0.10.0
libtpu: 0.0.40
codegen_flags: <defaults>
</compile_context>

<pallas_src>
import functools
import inspect
import math

import jax
import jax.numpy as jnp
from jax import lax
from jax.experimental import pallas as pl
from jax.experimental.pallas import tpu as pltpu


# ----------------------------- math helpers (kernel + wrapper + reference) -------


def _layernorm(x, eps=1e-6):
    # LayerNorm(elementwise_affine=False)
    mu = jnp.mean(x, axis=-1, keepdims=True)
    var = jnp.mean((x - mu) ** 2, axis=-1, keepdims=True)
    return (x - mu) * lax.rsqrt(var + eps)


def _gelu_tanh(x):
    # nn.GELU(approximate='tanh')
    c = math.sqrt(2.0 / math.pi)
    return 0.5 * x * (1.0 + jnp.tanh(c * (x + 0.044715 * x * x * x)))


def _t2i_modulate(x, shift, scale):
    return x * (1.0 + scale) + shift


# ----------------------------------- Pallas kernel -------------------------------


def sana_block_kernel(
    x_ref, mod_ref,
    ks_ref, vs_ref, kc_ref, vc_ref,
    qw_ref, qb_ref, apw_ref, apb_ref,
    cqw_ref, cqb_ref, cpw_ref, cpb_ref,
    f1w_ref, f1b_ref, f2w_ref, f2b_ref,
    out_ref,
    *, num_heads, kv_tile_self, kv_tile_cross, hd_tile,
):
    """One (batch element, query tile) of a full SanaBlock forward pass."""
    bf16 = jnp.bfloat16
    f32 = jnp.float32
    C = x_ref.shape[-1]
    H = num_heads
    D = C // H
    Hd = f1w_ref.shape[-1]

    # adaLN-single modulation (scale_shift_table + t, precomputed outside).
    mod = mod_ref[...]                                     # (6, C) f32
    shift_msa, scale_msa, gate_msa = mod[0:1], mod[1:2], mod[2:3]
    shift_mlp, scale_mlp, gate_mlp = mod[3:4], mod[4:5], mod[5:6]

    x = x_ref[...].astype(f32)                             # (TQ, C)
    TQ = x.shape[0]

    # TODO(synk): replace slice+stack head split/merge with pltpu.einshape once
    # the grouped-axis relayout is validated on all generations; only the small
    # per-tile q / o tensors go through it (K/V are pre-split outside the kernel).
    def split_heads(z):                                    # (TQ, C) -> (H, TQ, D)
        return jnp.stack([z[:, h * D:(h + 1) * D] for h in range(H)], axis=0)

    def merge_heads(z):                                    # (H, TQ, D) -> (TQ, C)
        return jnp.concatenate([z[h] for h in range(H)], axis=-1)

    def flash_attn(q, k_ref, v_ref, kv_tile):
        # Online-softmax attention; only an (H, TQ, kv_tile) score slab is live.
        # The 1/sqrt(D) scale is already folded into the q projection weights.
        qh = split_heads(q).astype(bf16)                   # (H, TQ, D)
        kv_len = k_ref.shape[1]
        n_kv = kv_len // kv_tile

        def body(i, carry):
            m, l, acc = carry
            off = pl.multiple_of(i * kv_tile, kv_tile)
            k = k_ref[:, pl.ds(off, kv_tile), :]           # (H, TK, D) bf16
            v = v_ref[:, pl.ds(off, kv_tile), :]
            s = jnp.einsum("hqd,hkd->hqk", qh, k,
                           preferred_element_type=f32)     # (H, TQ, TK) f32
            m_new = jnp.maximum(m, jnp.max(s, axis=-1, keepdims=True))
            alpha = jnp.exp(m - m_new)
            p = jnp.exp(s - m_new)
            l_new = alpha * l + jnp.sum(p, axis=-1, keepdims=True)
            acc_new = alpha * acc + jnp.einsum(
                "hqk,hkd->hqd", p.astype(bf16), v, preferred_element_type=f32)
            return m_new, l_new, acc_new

        carry = (jnp.full((H, TQ, 1), -jnp.inf, f32),
                 jnp.zeros((H, TQ, 1), f32),
                 jnp.zeros((H, TQ, D), f32))
        _, l, acc = lax.fori_loop(0, n_kv, body, carry)
        acc = acc * pl.reciprocal(l, approx=True)          # EUP slot, not VALU
        return merge_heads(acc)                            # (TQ, C) f32

    # ---------------- self attention (FlashAttention, qkv_bias=True) ----------
    h = _t2i_modulate(_layernorm(x), shift_msa, scale_msa)
    q = jnp.dot(h.astype(bf16), qw_ref[...],
                preferred_element_type=f32) + qb_ref[...]
    attn = flash_attn(q, ks_ref, vs_ref, kv_tile_self)
    attn = jnp.dot(attn.astype(bf16), apw_ref[...],
                   preferred_element_type=f32) + apb_ref[...]
    x = x + gate_msa * attn

    # ---------------- cross attention (MultiHeadCrossAttention, mask=None) ----
    # TODO(synk): variable-length text masks (mask != None) are not supported.
    q2 = jnp.dot(x.astype(bf16), cqw_ref[...],
                 preferred_element_type=f32) + cqb_ref[...]
    cross = flash_attn(q2, kc_ref, vc_ref, kv_tile_cross)
    cross = jnp.dot(cross.astype(bf16), cpw_ref[...],
                    preferred_element_type=f32) + cpb_ref[...]
    x = x + cross

    # ---------------- MLP (fc1 -> gelu_tanh -> fc2), hidden-dim tiled ---------
    h = _t2i_modulate(_layernorm(x), shift_mlp, scale_mlp).astype(bf16)
    acc = None
    for ci in range(Hd // hd_tile):                        # static -> static slices
        lo = ci * hd_tile
        h1 = _gelu_tanh(jnp.dot(h, f1w_ref[:, lo:lo + hd_tile],
                                preferred_element_type=f32)
                        + f1b_ref[:, lo:lo + hd_tile])
        part = jnp.dot(h1.astype(bf16), f2w_ref[lo:lo + hd_tile, :],
                       preferred_element_type=f32)
        acc = part if acc is None else acc + part
    o = acc + f2b_ref[...]
    x = x + gate_mlp * o

    out_ref[...] = x.astype(out_ref.dtype)


# ----------------------------------- wrapper --------------------------------------


def prepare_sana_block_params(params, num_heads):
    """One-time weight prep: bf16 cast (avoids per-step f32 weight re-reads from
    HBM) and folding of the 1/sqrt(head_dim) softmax scale into the q projections."""
    C = params["attn_pw"].shape[0]
    D = C // num_heads
    scale = 1.0 / math.sqrt(D)
    bf16 = jnp.bfloat16
    f32 = jnp.float32
    qkv_w, qkv_b = params["qkv_w"], params["qkv_b"]
    return {
        "sst": params["sst"].astype(f32),
        "self_q_w": (qkv_w[:, :C] * scale).astype(bf16),
        "self_q_b": (qkv_b[:, :C] * scale).astype(f32),
        "self_kv_w": qkv_w[:, C:].astype(bf16),
        "self_kv_b": qkv_b[:, C:].astype(f32),
        "self_p_w": params["attn_pw"].astype(bf16),
        "self_p_b": params["attn_pb"].astype(f32),
        "cross_q_w": (params["q_w"] * scale).astype(bf16),
        "cross_q_b": (params["q_b"] * scale).astype(f32),
        "cross_kv_w": params["kv_w"].astype(bf16),
        "cross_kv_b": params["kv_b"].astype(f32),
        "cross_p_w": params["cpw"].astype(bf16),
        "cross_p_b": params["cpb"].astype(f32),
        "fc1_w": params["fc1_w"].astype(bf16),
        "fc1_b": params["fc1_b"].astype(f32),
        "fc2_w": params["fc2_w"].astype(bf16),
        "fc2_b": params["fc2_b"].astype(f32),
    }


def _pick_tile(n, cap):
    """Largest tile <= cap dividing n (sublane-aligned when possible)."""
    if n <= cap:
        return n
    for step in (8, 1):
        start = cap - cap % step
        for tile in range(start, 0, -step):
            if tile > 0 and n % tile == 0:
                return tile
    return n


def _vmem_limit_bytes():
    """Scoped-VMEM limit: above the 16/32 MiB defaults, below physical capacity
    (128 MiB on v5e/v6e, 64 MiB on v7x)."""
    try:
        cap = int(pltpu.get_tpu_info().vmem_capacity_bytes)
        return int(min(100 << 20, (cap // 4) * 3))
    except Exception:  # conservative cross-generation fallback
        return 48 << 20


def sana_block(x, y, t, prepared, num_heads, *, q_tile=None,
               kv_tile_self=None, kv_tile_cross=None, hd_tile=None):
    B, N, C = x.shape
    L = y.shape[1]
    H = num_heads
    assert C % H == 0
    D = C // H
    Hd = prepared["fc1_w"].shape[1]
    bf16 = jnp.bfloat16
    f32 = jnp.float32

    TQ = q_tile if q_tile is not None else _pick_tile(N, 256)
    TKS = kv_tile_self if kv_tile_self is not None else _pick_tile(N, 512)
    TKC = kv_tile_cross if kv_tile_cross is not None else _pick_tile(L, 512)
    THD = hd_tile if hd_tile is not None else _pick_tile(Hd, 1024)
    # TODO(synk): add a padding path for sizes not divisible by the tiles.
    assert N % TQ == 0 and N % TKS == 0 and L % TKC == 0 and Hd % THD == 0

    # adaLN-single modulation (B, 6, C), computed once in XLA.
    mod = prepared["sst"][None] + t.reshape(B, 6, C).astype(f32)

    def to_heads(z, M):  # (B, M, C) -> (B, H, M, D) head-major
        return z.reshape(B, M, H, D).transpose(0, 2, 1, 3)

    # Self / cross K,V are precomputed OUTSIDE the kernel (plain XLA matmuls)
    # and fed head-major in bf16: removes the former full-x second input and the
    # qt==0 serialization bubble, and frees both grid axes to be parallel.
    h_full = _t2i_modulate(_layernorm(x.astype(f32)), mod[:, 0:1], mod[:, 1:2])
    kv_s = jnp.dot(h_full.astype(bf16), prepared["self_kv_w"],
                   preferred_element_type=f32) + prepared["self_kv_b"][0]
    k_self = to_heads(kv_s[..., :C], N).astype(bf16)
    v_self = to_heads(kv_s[..., C:], N).astype(bf16)

    kv_c = jnp.dot(y.astype(bf16), prepared["cross_kv_w"],
                   preferred_element_type=f32) + prepared["cross_kv_b"][0]
    k_cross = to_heads(kv_c[..., :C], L).astype(bf16)
    v_cross = to_heads(kv_c[..., C:], L).astype(bf16)

    def tile_map(b, qt):
        return (b, qt, 0)

    def b3_map(b, qt):
        return (b, 0, 0)

    def b4_map(b, qt):
        return (b, 0, 0, 0)

    # Constant-index weight blocks: single-buffer when this jax version supports
    # pipeline_mode (no point double-buffering a block whose index never changes;
    # halves resident weight VMEM).
    w_kwargs = {}
    try:
        if hasattr(pl, "Buffered") and \
                "pipeline_mode" in inspect.signature(pl.BlockSpec).parameters:
            w_kwargs["pipeline_mode"] = pl.Buffered(1)
    except (TypeError, ValueError):
        pass

    def w_spec(shape):
        return pl.BlockSpec(shape, lambda b, qt: (0, 0), **w_kwargs)

    in_specs = [
        pl.BlockSpec((None, TQ, C), tile_map),            # x query tile
        pl.BlockSpec((None, 6, C), b3_map),               # adaLN modulation
        pl.BlockSpec((None, H, N, D), b4_map),            # self K (head-major bf16)
        pl.BlockSpec((None, H, N, D), b4_map),            # self V
        pl.BlockSpec((None, H, L, D), b4_map),            # cross K
        pl.BlockSpec((None, H, L, D), b4_map),            # cross V
        w_spec((C, C)), w_spec((1, C)),                   # self q proj (scale folded)
        w_spec((C, C)), w_spec((1, C)),                   # self out proj
        w_spec((C, C)), w_spec((1, C)),                   # cross q proj (scale folded)
        w_spec((C, C)), w_spec((1, C)),                   # cross out proj
        w_spec((C, Hd)), w_spec((1, Hd)),                 # mlp fc1
        w_spec((Hd, C)), w_spec((1, C)),                  # mlp fc2
    ]

    kernel = functools.partial(
        sana_block_kernel, num_heads=H,
        kv_tile_self=TKS, kv_tile_cross=TKC, hd_tile=THD)

    return pl.pallas_call(
        kernel,
        out_shape=jax.ShapeDtypeStruct((B, N, C), x.dtype),
        grid=(B, N // TQ),
        in_specs=in_specs,
        out_specs=pl.BlockSpec((None, TQ, C), tile_map),
        compiler_params=pltpu.CompilerParams(
            # No cross-iteration state in the kernel any more -> both axes are
            # independent (megacore / 2-TC v7x can split query tiles and batch).
            dimension_semantics=("parallel", "parallel"),
            vmem_limit_bytes=_vmem_limit_bytes(),
        ),
    )(x, mod, k_self, v_self, k_cross, v_cross,
      prepared["self_q_w"], prepared["self_q_b"],
      prepared["self_p_w"], prepared["self_p_b"],
      prepared["cross_q_w"], prepared["cross_q_b"],
      prepared["cross_p_w"], prepared["cross_p_b"],
      prepared["fc1_w"], prepared["fc1_b"],
      prepared["fc2_w"], prepared["fc2_b"])


# ----------------------------------- pure-JAX reference ---------------------------


def sana_block_ref(x, y, t, p, num_heads):
    B, N, C = x.shape
    D = C // num_heads
    scale = 1.0 / math.sqrt(D)
    mod = p["sst"][None] + t.reshape(B, 6, C)
    shift_msa, scale_msa, gate_msa = mod[:, 0:1], mod[:, 1:2], mod[:, 2:3]
    shift_mlp, scale_mlp, gate_mlp = mod[:, 3:4], mod[:, 4:5], mod[:, 5:6]

    def heads(z):
        return z.reshape(B, -1, num_heads, D).transpose(0, 2, 1, 3)

    def mha(q, k, v):
        s = jnp.einsum("bhnd,bhmd->bhnm", heads(q), heads(k)) * scale
        pr = jax.nn.softmax(s, axis=-1)
        o = jnp.einsum("bhnm,bhmd->bhnd", pr, heads(v))
        return o.transpose(0, 2, 1, 3).reshape(B, -1, C)

    h = _t2i_modulate(_layernorm(x), shift_msa, scale_msa)
    qkv = h @ p["qkv_w"] + p["qkv_b"][0]
    o = mha(qkv[..., :C], qkv[..., C:2 * C], qkv[..., 2 * C:])
    o = o @ p["attn_pw"] + p["attn_pb"][0]
    x = x + gate_msa * o

    q2 = x @ p["q_w"] + p["q_b"][0]
    kv = y @ p["kv_w"] + p["kv_b"][0]
    o = mha(q2, kv[..., :C], kv[..., C:])
    o = o @ p["cpw"] + p["cpb"][0]
    x = x + o

    h = _t2i_modulate(_layernorm(x), shift_mlp, scale_mlp)
    h1 = _gelu_tanh(h @ p["fc1_w"] + p["fc1_b"][0])
    o = h1 @ p["fc2_w"] + p["fc2_b"][0]
    return x + gate_mlp * o


# ----------------------------------- main ------------------------------------------


if __name__ == "__main__":
    B, N, C = 2, 16, 32         # batch, image tokens, hidden_size
    L = 16                      # text tokens
    num_heads = 4               # head_dim = 8
    mlp_ratio = 4.0
    Hd = int(C * mlp_ratio)     # 128

    key = jax.random.PRNGKey(0)
    ks = jax.random.split(key, 32)
    ki = iter(ks)

    def w(shape, std=0.02):
        return jax.random.normal(next(ki), shape, jnp.float32) * std

    params = {
        "sst": jax.random.normal(next(ki), (6, C), jnp.float32) / math.sqrt(C),
        "qkv_w": w((C, 3 * C)), "qkv_b": w((1, 3 * C)),
        "attn_pw": w((C, C)), "attn_pb": w((1, C)),
        "q_w": w((C, C)), "q_b": w((1, C)),
        "kv_w": w((C, 2 * C)), "kv_b": w((1, 2 * C)),
        "cpw": w((C, C)), "cpb": w((1, C)),
        "fc1_w": w((C, Hd)), "fc1_b": w((1, Hd)),
        "fc2_w": w((Hd, C)), "fc2_b": w((1, C)),
    }

    x = jax.random.normal(next(ki), (B, N, C), jnp.float32)
    y = jax.random.normal(next(ki), (B, L, C), jnp.float32)
    t = jax.random.normal(next(ki), (B, 6 * C), jnp.float32)

    prepared = prepare_sana_block_params(params, num_heads)

    # Small tiles so every path is exercised: 2 query tiles per batch element,
    # 2 KV tiles in both attentions, 2 MLP hidden-dim chunks.
    out = sana_block(x, y, t, prepared, num_heads,
                     q_tile=8, kv_tile_self=8, kv_tile_cross=8, hd_tile=64)
    out = jax.block_until_ready(out)

    ref = sana_block_ref(x, y, t, params, num_heads)
    assert out.shape == (B, N, C)
    # bf16 matmul operands (f32 accumulation) -> relaxed tolerance vs f32 reference.
    assert jnp.allclose(out, ref, atol=1e-2, rtol=1e-2), "mismatch vs JAX reference"

    print("KERNEL_OK")
</pallas_src>

<mosaic_0001>
module attributes {stable_mosaic.version = 11 : i64} {
  func.func @sana_block_kernel(%arg0: i32, %arg1: i32, %arg2: memref<1x8x32xf32, #tpu.memory_space<vmem>>, %arg3: memref<1x6x32xf32, #tpu.memory_space<vmem>>, %arg4: memref<1x4x16x8xbf16, #tpu.memory_space<vmem>>, %arg5: memref<1x4x16x8xbf16, #tpu.memory_space<vmem>>, %arg6: memref<1x4x16x8xbf16, #tpu.memory_space<vmem>>, %arg7: memref<1x4x16x8xbf16, #tpu.memory_space<vmem>>, %arg8: memref<32x32xbf16, #tpu.memory_space<vmem>>, %arg9: memref<1x32xf32, #tpu.memory_space<vmem>>, %arg10: memref<32x32xbf16, #tpu.memory_space<vmem>>, %arg11: memref<1x32xf32, #tpu.memory_space<vmem>>, %arg12: memref<32x32xbf16, #tpu.memory_space<vmem>>, %arg13: memref<1x32xf32, #tpu.memory_space<vmem>>, %arg14: memref<32x32xbf16, #tpu.memory_space<vmem>>, %arg15: memref<1x32xf32, #tpu.memory_space<vmem>>, %arg16: memref<32x128xbf16, #tpu.memory_space<vmem>>, %arg17: memref<1x128xf32, #tpu.memory_space<vmem>>, %arg18: memref<128x32xbf16, #tpu.memory_space<vmem>>, %arg19: memref<1x32xf32, #tpu.memory_space<vmem>>, %arg20: memref<1x8x32xf32, #tpu.memory_space<vmem>>) attributes {dimension_semantics = [#tpu.dimension_semantics<parallel>, #tpu.dimension_semantics<parallel>], iteration_bounds = array<i64: 2, 2>, scalar_prefetch = 0 : i64, scratch_operands = 0 : i64, tpu.core_type = #tpu.core_type<tc>, window_params = [{transform_indices = @transform_0, window_bounds = array<i64: 1, 8, 32>}, {transform_indices = @transform_1, window_bounds = array<i64: 1, 6, 32>}, {transform_indices = @transform_2, window_bounds = array<i64: 1, 4, 16, 8>}, {transform_indices = @transform_3, window_bounds = array<i64: 1, 4, 16, 8>}, {transform_indices = @transform_4, window_bounds = array<i64: 1, 4, 16, 8>}, {transform_indices = @transform_5, window_bounds = array<i64: 1, 4, 16, 8>}, {pipeline_mode = #tpu.pipeline_mode<synchronous>, transform_indices = @transform_6, window_bounds = array<i64: 32, 32>}, {pipeline_mode = #tpu.pipeline_mode<synchronous>, transform_indices = @transform_7, window_bounds = array<i64: 1, 32>}, {pipeline_mode = #tpu.pipeline_mode<synchronous>, transform_indices = @transform_8, window_bounds = array<i64: 32, 32>}, {pipeline_mode = #tpu.pipeline_mode<synchronous>, transform_indices = @transform_9, window_bounds = array<i64: 1, 32>}, {pipeline_mode = #tpu.pipeline_mode<synchronous>, transform_indices = @transform_10, window_bounds = array<i64: 32, 32>}, {pipeline_mode = #tpu.pipeline_mode<synchronous>, transform_indices = @transform_11, window_bounds = array<i64: 1, 32>}, {pipeline_mode = #tpu.pipeline_mode<synchronous>, transform_indices = @transform_12, window_bounds = array<i64: 32, 32>}, {pipeline_mode = #tpu.pipeline_mode<synchronous>, transform_indices = @transform_13, window_bounds = array<i64: 1, 32>}, {pipeline_mode = #tpu.pipeline_mode<synchronous>, transform_indices = @transform_14, window_bounds = array<i64: 32, 128>}, {pipeline_mode = #tpu.pipeline_mode<synchronous>, transform_indices = @transform_15, window_bounds = array<i64: 1, 128>}, {pipeline_mode = #tpu.pipeline_mode<synchronous>, transform_indices = @transform_16, window_bounds = array<i64: 128, 32>}, {pipeline_mode = #tpu.pipeline_mode<synchronous>, transform_indices = @transform_17, window_bounds = array<i64: 1, 32>}, {transform_indices = @transform_18, window_bounds = array<i64: 1, 8, 32>}]} {
    %c0 = arith.constant 0 : index
    %c0_0 = arith.constant 0 : index
    %c0_1 = arith.constant 0 : index
    %0 = vector.load %arg3[%c0, %c0_0, %c0_1] : memref<1x6x32xf32, #tpu.memory_space<vmem>>, vector<1x6x32xf32>
    %1 = vector.shape_cast %0 : vector<1x6x32xf32> to vector<6x32xf32>
    %2 = vector.extract_strided_slice %1 {offsets = [0, 0], sizes = [1, 32], strides = [1, 1]} : vector<6x32xf32> to vector<1x32xf32>
    %3 = vector.extract_strided_slice %1 {offsets = [1, 0], sizes = [1, 32], strides = [1, 1]} : vector<6x32xf32> to vector<1x32xf32>
    %4 = vector.extract_strided_slice %1 {offsets = [2, 0], sizes = [1, 32], strides = [1, 1]} : vector<6x32xf32> to vector<1x32xf32>
    %5 = vector.extract_strided_slice %1 {offsets = [3, 0], sizes = [1, 32], strides = [1, 1]} : vector<6x32xf32> to vector<1x32xf32>
    %6 = vector.extract_strided_slice %1 {offsets = [4, 0], sizes = [1, 32], strides = [1, 1]} : vector<6x32xf32> to vector<1x32xf32>
    %7 = vector.extract_strided_slice %1 {offsets = [5, 0], sizes = [1, 32], strides = [1, 1]} : vector<6x32xf32> to vector<1x32xf32>
    %c0_2 = arith.constant 0 : index
    %c0_3 = arith.constant 0 : index
    %c0_4 = arith.constant 0 : index
    %8 = vector.load %arg2[%c0_2, %c0_3, %c0_4] : memref<1x8x32xf32, #tpu.memory_space<vmem>>, vector<1x8x32xf32>
    %9 = vector.shape_cast %8 : vector<1x8x32xf32> to vector<8x32xf32>
    %cst = arith.constant dense<0.000000e+00> : vector<8xf32>
    %10 = vector.multi_reduction <add>, %9, %cst [1] : vector<8x32xf32> to vector<8xf32>
    %11 = vector.shape_cast %10 : vector<8xf32> to vector<8x1xf32>
    %cst_5 = arith.constant 3.200000e+01 : f32
    %12 = vector.broadcast %cst_5 : f32 to vector<8x1xf32>
    %13 = arith.divf %11, %12 : vector<8x1xf32>
    %14 = vector.broadcast %13 : vector<8x1xf32> to vector<8x32xf32>
    %15 = arith.subf %9, %14 : vector<8x32xf32>
    %16 = arith.mulf %15, %15 : vector<8x32xf32>
    %cst_6 = arith.constant dense<0.000000e+00> : vector<8xf32>
    %17 = vector.multi_reduction <add>, %16, %cst_6 [1] : vector<8x32xf32> to vector<8xf32>
    %18 = vector.shape_cast %17 : vector<8xf32> to vector<8x1xf32>
    %cst_7 = arith.constant 3.200000e+01 : f32
    %19 = vector.broadcast %cst_7 : f32 to vector<8x1xf32>
    %20 = arith.divf %18, %19 : vector<8x1xf32>
    %21 = vector.broadcast %13 : vector<8x1xf32> to vector<8x32xf32>
    %22 = arith.subf %9, %21 : vector<8x32xf32>
    %cst_8 = arith.constant 9.99999997E-7 : f32
    %23 = vector.broadcast %cst_8 : f32 to vector<8x1xf32>
    %24 = arith.addf %20, %23 : vector<8x1xf32>
    %25 = math.rsqrt %24 : vector<8x1xf32>
    %26 = vector.broadcast %25 : vector<8x1xf32> to vector<8x32xf32>
    %27 = arith.mulf %22, %26 : vector<8x32xf32>
    %cst_9 = arith.constant 1.000000e+00 : f32
    %28 = vector.broadcast %cst_9 : f32 to vector<1x32xf32>
    %29 = arith.addf %28, %3 : vector<1x32xf32>
    %30 = vector.broadcast %29 : vector<1x32xf32> to vector<8x32xf32>
    %31 = arith.mulf %27, %30 : vector<8x32xf32>
    %32 = vector.broadcast %2 : vector<1x32xf32> to vector<8x32xf32>
    %33 = arith.addf %31, %32 : vector<8x32xf32>
    %34 = arith.truncf %33 : vector<8x32xf32> to vector<8x32xbf16>
    %c0_10 = arith.constant 0 : index
    %c0_11 = arith.constant 0 : index
    %35 = vector.load %arg8[%c0_10, %c0_11] : memref<32x32xbf16, #tpu.memory_space<vmem>>, vector<32x32xbf16>
    %cst_12 = arith.constant dense<0.000000e+00> : vector<8x32xf32>
    %36 = tpu.matmul %34, %35, %cst_12 {dimension_numbers = #tpu.dot_dimension_numbers<[1], [0], [0], [1], [0, 0, 1, 1], [], []>} : vector<8x32xbf16>, vector<32x32xbf16>, vector<8x32xf32> -> vector<8x32xf32>
    %c0_13 = arith.constant 0 : index
    %c0_14 = arith.constant 0 : index
    %37 = vector.load %arg9[%c0_13, %c0_14] : memref<1x32xf32, #tpu.memory_space<vmem>>, vector<1x32xf32>
    %38 = vector.broadcast %37 : vector<1x32xf32> to vector<8x32xf32>
    %39 = arith.addf %36, %38 : vector<8x32xf32>
    %40 = vector.extract_strided_slice %39 {offsets = [0, 0], sizes = [8, 8], strides = [1, 1]} : vector<8x32xf32> to vector<8x8xf32>
    %41 = vector.extract_strided_slice %39 {offsets = [0, 8], sizes = [8, 8], strides = [1, 1]} : vector<8x32xf32> to vector<8x8xf32>
    %42 = vector.extract_strided_slice %39 {offsets = [0, 16], sizes = [8, 8], strides = [1, 1]} : vector<8x32xf32> to vector<8x8xf32>
    %43 = vector.extract_strided_slice %39 {offsets = [0, 24], sizes = [8, 8], strides = [1, 1]} : vector<8x32xf32> to vector<8x8xf32>
    %44 = vector.shape_cast %40 : vector<8x8xf32> to vector<1x8x8xf32>
    %45 = vector.shape_cast %41 : vector<8x8xf32> to vector<1x8x8xf32>
    %46 = vector.shape_cast %42 : vector<8x8xf32> to vector<1x8x8xf32>
    %47 = vector.shape_cast %43 : vector<8x8xf32> to vector<1x8x8xf32>
    %48 = tpu.concatenate %44, %45, %46, %47 in 0 : vector<1x8x8xf32>, vector<1x8x8xf32>, vector<1x8x8xf32>, vector<1x8x8xf32> -> vector<4x8x8xf32>
    %49 = arith.truncf %48 : vector<4x8x8xf32> to vector<4x8x8xbf16>
    %cst_15 = arith.constant 0xFF800000 : f32
    %50 = vector.broadcast %cst_15 : f32 to vector<4x8x1xf32>
    %cst_16 = arith.constant 0.000000e+00 : f32
    %51 = vector.broadcast %cst_16 : f32 to vector<4x8x1xf32>
    %cst_17 = arith.constant 0.000000e+00 : f32
    %52 = vector.broadcast %cst_17 : f32 to vector<4x8x8xf32>
    %c0_i32 = arith.constant 0 : i32
    %c2_i32 = arith.constant 2 : i32
    %53 = arith.addi %c0_i32, %c2_i32 : i32
    %c1_i32 = arith.constant 1 : i32
    %54:3 = scf.for %arg21 = %c0_i32 to %53 step %c1_i32 iter_args(%arg22 = %50, %arg23 = %51, %arg24 = %52) -> (vector<4x8x1xf32>, vector<4x8x1xf32>, vector<4x8x8xf32>)  : i32 {
      %c8_i32 = arith.constant 8 : i32
      %193 = arith.muli %arg21, %c8_i32 : i32
      %194 = tpu.assume_multiple %193, 8 : i32
      %c0_75 = arith.constant 0 : index
      %c0_76 = arith.constant 0 : index
      %195 = arith.index_cast %194 : i32 to index
      %c0_77 = arith.constant 0 : index
      %196 = vector.load %arg4[%c0_75, %c0_76, %195, %c0_77] : memref<1x4x16x8xbf16, #tpu.memory_space<vmem>>, vector<1x4x8x8xbf16>
      %197 = vector.shape_cast %196 : vector<1x4x8x8xbf16> to vector<4x8x8xbf16>
      %c0_78 = arith.constant 0 : index
      %c0_79 = arith.constant 0 : index
      %198 = arith.index_cast %194 : i32 to index
      %c0_80 = arith.constant 0 : index
      %199 = vector.load %arg5[%c0_78, %c0_79, %198, %c0_80] : memref<1x4x16x8xbf16, #tpu.memory_space<vmem>>, vector<1x4x8x8xbf16>
      %200 = vector.shape_cast %199 : vector<1x4x8x8xbf16> to vector<4x8x8xbf16>
      "tpu.trace_start"() <{level = 10 : i32, message = "hqd,hkd->hqk"}> : () -> ()
      %cst_81 = arith.constant dense<0.000000e+00> : vector<4x8x8xf32>
      %201 = tpu.matmul %49, %197, %cst_81 {dimension_numbers = #tpu.dot_dimension_numbers<[2], [2], [1], [1], [0, 0, 0, 1, 1, 1], [0], [0]>} : vector<4x8x8xbf16>, vector<4x8x8xbf16>, vector<4x8x8xf32> -> vector<4x8x8xf32>
      "tpu.trace_stop"() : () -> ()
      %cst_82 = arith.constant dense<0xFF800000> : vector<4x8xf32>
      %202 = vector.multi_reduction <maximumf>, %201, %cst_82 [2] : vector<4x8x8xf32> to vector<4x8xf32>
      %203 = vector.shape_cast %202 : vector<4x8xf32> to vector<4x8x1xf32>
      %204 = arith.maximumf %arg22, %203 : vector<4x8x1xf32>
      %205 = arith.subf %arg22, %204 : vector<4x8x1xf32>
      %206 = math.exp %205 : vector<4x8x1xf32>
      %207 = vector.broadcast %204 : vector<4x8x1xf32> to vector<4x8x8xf32>
      %208 = arith.subf %201, %207 : vector<4x8x8xf32>
      %209 = math.exp %208 : vector<4x8x8xf32>
      %210 = arith.mulf %206, %arg23 : vector<4x8x1xf32>
      %cst_83 = arith.constant dense<0.000000e+00> : vector<4x8xf32>
      %211 = vector.multi_reduction <add>, %209, %cst_83 [2] : vector<4x8x8xf32> to vector<4x8xf32>
      %212 = vector.shape_cast %211 : vector<4x8xf32> to vector<4x8x1xf32>
      %213 = arith.addf %210, %212 : vector<4x8x1xf32>
      %214 = vector.broadcast %206 : vector<4x8x1xf32> to vector<4x8x8xf32>
      %215 = arith.mulf %214, %arg24 : vector<4x8x8xf32>
      %216 = arith.truncf %209 : vector<4x8x8xf32> to vector<4x8x8xbf16>
      "tpu.trace_start"() <{level = 10 : i32, message = "hqk,hkd->hqd"}> : () -> ()
      %cst_84 = arith.constant dense<0.000000e+00> : vector<4x8x8xf32>
      %217 = tpu.matmul %216, %200, %cst_84 {dimension_numbers = #tpu.dot_dimension_numbers<[2], [1], [1], [2], [0, 0, 0, 1, 1, 2], [0], [0]>} : vector<4x8x8xbf16>, vector<4x8x8xbf16>, vector<4x8x8xf32> -> vector<4x8x8xf32>
      "tpu.trace_stop"() : () -> ()
      %218 = arith.addf %215, %217 : vector<4x8x8xf32>
      scf.yield %204, %213, %218 : vector<4x8x1xf32>, vector<4x8x1xf32>, vector<4x8x8xf32>
    }
    %c2_i32_18 = arith.constant 2 : i32
    %55 = tpu.reciprocal %54#1 {approx = true} : vector<4x8x1xf32> -> vector<4x8x1xf32>
    %56 = vector.broadcast %55 : vector<4x8x1xf32> to vector<4x8x8xf32>
    %57 = arith.mulf %54#2, %56 : vector<4x8x8xf32>
    %58 = vector.extract_strided_slice %57 {offsets = [0, 0, 0], sizes = [1, 8, 8], strides = [1, 1, 1]} : vector<4x8x8xf32> to vector<1x8x8xf32>
    %59 = vector.shape_cast %58 : vector<1x8x8xf32> to vector<8x8xf32>
    %60 = vector.extract_strided_slice %57 {offsets = [1, 0, 0], sizes = [1, 8, 8], strides = [1, 1, 1]} : vector<4x8x8xf32> to vector<1x8x8xf32>
    %61 = vector.shape_cast %60 : vector<1x8x8xf32> to vector<8x8xf32>
    %62 = vector.extract_strided_slice %57 {offsets = [2, 0, 0], sizes = [1, 8, 8], strides = [1, 1, 1]} : vector<4x8x8xf32> to vector<1x8x8xf32>
    %63 = vector.shape_cast %62 : vector<1x8x8xf32> to vector<8x8xf32>
    %64 = vector.extract_strided_slice %57 {offsets = [3, 0, 0], sizes = [1, 8, 8], strides = [1, 1, 1]} : vector<4x8x8xf32> to vector<1x8x8xf32>
    %65 = vector.shape_cast %64 : vector<1x8x8xf32> to vector<8x8xf32>
    %66 = tpu.concatenate %59, %61, %63, %65 in 1 : vector<8x8xf32>, vector<8x8xf32>, vector<8x8xf32>, vector<8x8xf32> -> vector<8x32xf32>
    %67 = arith.truncf %66 : vector<8x32xf32> to vector<8x32xbf16>
    %c0_19 = arith.constant 0 : index
    %c0_20 = arith.constant 0 : index
    %68 = vector.load %arg10[%c0_19, %c0_20] : memref<32x32xbf16, #tpu.memory_space<vmem>>, vector<32x32xbf16>
    %cst_21 = arith.constant dense<0.000000e+00> : vector<8x32xf32>
    %69 = tpu.matmul %67, %68, %cst_21 {dimension_numbers = #tpu.dot_dimension_numbers<[1], [0], [0], [1], [0, 0, 1, 1], [], []>} : vector<8x32xbf16>, vector<32x32xbf16>, vector<8x32xf32> -> vector<8x32xf32>
    %c0_22 = arith.constant 0 : index
    %c0_23 = arith.constant 0 : index
    %70 = vector.load %arg11[%c0_22, %c0_23] : memref<1x32xf32, #tpu.memory_space<vmem>>, vector<1x32xf32>
    %71 = vector.broadcast %70 : vector<1x32xf32> to vector<8x32xf32>
    %72 = arith.addf %69, %71 : vector<8x32xf32>
    %73 = vector.broadcast %4 : vector<1x32xf32> to vector<8x32xf32>
    %74 = arith.mulf %73, %72 : vector<8x32xf32>
    %75 = arith.addf %9, %74 : vector<8x32xf32>
    %76 = arith.truncf %75 : vector<8x32xf32> to vector<8x32xbf16>
    %c0_24 = arith.constant 0 : index
    %c0_25 = arith.constant 0 : index
    %77 = vector.load %arg12[%c0_24, %c0_25] : memref<32x32xbf16, #tpu.memory_space<vmem>>, vector<32x32xbf16>
    %cst_26 = arith.constant dense<0.000000e+00> : vector<8x32xf32>
    %78 = tpu.matmul %76, %77, %cst_26 {dimension_numbers = #tpu.dot_dimension_numbers<[1], [0], [0], [1], [0, 0, 1, 1], [], []>} : vector<8x32xbf16>, vector<32x32xbf16>, vector<8x32xf32> -> vector<8x32xf32>
    %c0_27 = arith.constant 0 : index
    %c0_28 = arith.constant 0 : index
    %79 = vector.load %arg13[%c0_27, %c0_28] : memref<1x32xf32, #tpu.memory_space<vmem>>, vector<1x32xf32>
    %80 = vector.broadcast %79 : vector<1x32xf32> to vector<8x32xf32>
    %81 = arith.addf %78, %80 : vector<8x32xf32>
    %82 = vector.extract_strided_slice %81 {offsets = [0, 0], sizes = [8, 8], strides = [1, 1]} : vector<8x32xf32> to vector<8x8xf32>
    %83 = vector.extract_strided_slice %81 {offsets = [0, 8], sizes = [8, 8], strides = [1, 1]} : vector<8x32xf32> to vector<8x8xf32>
    %84 = vector.extract_strided_slice %81 {offsets = [0, 16], sizes = [8, 8], strides = [1, 1]} : vector<8x32xf32> to vector<8x8xf32>
    %85 = vector.extract_strided_slice %81 {offsets = [0, 24], sizes = [8, 8], strides = [1, 1]} : vector<8x32xf32> to vector<8x8xf32>
    %86 = vector.shape_cast %82 : vector<8x8xf32> to vector<1x8x8xf32>
    %87 = vector.shape_cast %83 : vector<8x8xf32> to vector<1x8x8xf32>
    %88 = vector.shape_cast %84 : vector<8x8xf32> to vector<1x8x8xf32>
    %89 = vector.shape_cast %85 : vector<8x8xf32> to vector<1x8x8xf32>
    %90 = tpu.concatenate %86, %87, %88, %89 in 0 : vector<1x8x8xf32>, vector<1x8x8xf32>, vector<1x8x8xf32>, vector<1x8x8xf32> -> vector<4x8x8xf32>
    %91 = arith.truncf %90 : vector<4x8x8xf32> to vector<4x8x8xbf16>
    %cst_29 = arith.constant 0xFF800000 : f32
    %92 = vector.broadcast %cst_29 : f32 to vector<4x8x1xf32>
    %cst_30 = arith.constant 0.000000e+00 : f32
    %93 = vector.broadcast %cst_30 : f32 to vector<4x8x1xf32>
    %cst_31 = arith.constant 0.000000e+00 : f32
    %94 = vector.broadcast %cst_31 : f32 to vector<4x8x8xf32>
    %c0_i32_32 = arith.constant 0 : i32
    %c2_i32_33 = arith.constant 2 : i32
    %95 = arith.addi %c0_i32_32, %c2_i32_33 : i32
    %c1_i32_34 = arith.constant 1 : i32
    %96:3 = scf.for %arg21 = %c0_i32_32 to %95 step %c1_i32_34 iter_args(%arg22 = %92, %arg23 = %93, %arg24 = %94) -> (vector<4x8x1xf32>, vector<4x8x1xf32>, vector<4x8x8xf32>)  : i32 {
      %c8_i32 = arith.constant 8 : i32
      %193 = arith.muli %arg21, %c8_i32 : i32
      %194 = tpu.assume_multiple %193, 8 : i32
      %c0_75 = arith.constant 0 : index
      %c0_76 = arith.constant 0 : index
      %195 = arith.index_cast %194 : i32 to index
      %c0_77 = arith.constant 0 : index
      %196 = vector.load %arg6[%c0_75, %c0_76, %195, %c0_77] : memref<1x4x16x8xbf16, #tpu.memory_space<vmem>>, vector<1x4x8x8xbf16>
      %197 = vector.shape_cast %196 : vector<1x4x8x8xbf16> to vector<4x8x8xbf16>
      %c0_78 = arith.constant 0 : index
      %c0_79 = arith.constant 0 : index
      %198 = arith.index_cast %194 : i32 to index
      %c0_80 = arith.constant 0 : index
      %199 = vector.load %arg7[%c0_78, %c0_79, %198, %c0_80] : memref<1x4x16x8xbf16, #tpu.memory_space<vmem>>, vector<1x4x8x8xbf16>
      %200 = vector.shape_cast %199 : vector<1x4x8x8xbf16> to vector<4x8x8xbf16>
      "tpu.trace_start"() <{level = 10 : i32, message = "hqd,hkd->hqk"}> : () -> ()
      %cst_81 = arith.constant dense<0.000000e+00> : vector<4x8x8xf32>
      %201 = tpu.matmul %91, %197, %cst_81 {dimension_numbers = #tpu.dot_dimension_numbers<[2], [2], [1], [1], [0, 0, 0, 1, 1, 1], [0], [0]>} : vector<4x8x8xbf16>, vector<4x8x8xbf16>, vector<4x8x8xf32> -> vector<4x8x8xf32>
      "tpu.trace_stop"() : () -> ()
      %cst_82 = arith.constant dense<0xFF800000> : vector<4x8xf32>
      %202 = vector.multi_reduction <maximumf>, %201, %cst_82 [2] : vector<4x8x8xf32> to vector<4x8xf32>
      %203 = vector.shape_cast %202 : vector<4x8xf32> to vector<4x8x1xf32>
      %204 = arith.maximumf %arg22, %203 : vector<4x8x1xf32>
      %205 = arith.subf %arg22, %204 : vector<4x8x1xf32>
      %206 = math.exp %205 : vector<4x8x1xf32>
      %207 = vector.broadcast %204 : vector<4x8x1xf32> to vector<4x8x8xf32>
      %208 = arith.subf %201, %207 : vector<4x8x8xf32>
      %209 = math.exp %208 : vector<4x8x8xf32>
      %210 = arith.mulf %206, %arg23 : vector<4x8x1xf32>
      %cst_83 = arith.constant dense<0.000000e+00> : vector<4x8xf32>
      %211 = vector.multi_reduction <add>, %209, %cst_83 [2] : vector<4x8x8xf32> to vector<4x8xf32>
      %212 = vector.shape_cast %211 : vector<4x8xf32> to vector<4x8x1xf32>
      %213 = arith.addf %210, %212 : vector<4x8x1xf32>
      %214 = vector.broadcast %206 : vector<4x8x1xf32> to vector<4x8x8xf32>
      %215 = arith.mulf %214, %arg24 : vector<4x8x8xf32>
      %216 = arith.truncf %209 : vector<4x8x8xf32> to vector<4x8x8xbf16>
      "tpu.trace_start"() <{level = 10 : i32, message = "hqk,hkd->hqd"}> : () -> ()
      %cst_84 = arith.constant dense<0.000000e+00> : vector<4x8x8xf32>
      %217 = tpu.matmul %216, %200, %cst_84 {dimension_numbers = #tpu.dot_dimension_numbers<[2], [1], [1], [2], [0, 0, 0, 1, 1, 2], [0], [0]>} : vector<4x8x8xbf16>, vector<4x8x8xbf16>, vector<4x8x8xf32> -> vector<4x8x8xf32>
      "tpu.trace_stop"() : () -> ()
      %218 = arith.addf %215, %217 : vector<4x8x8xf32>
      scf.yield %204, %213, %218 : vector<4x8x1xf32>, vector<4x8x1xf32>, vector<4x8x8xf32>
    }
    %c2_i32_35 = arith.constant 2 : i32
    %97 = tpu.reciprocal %96#1 {approx = true} : vector<4x8x1xf32> -> vector<4x8x1xf32>
    %98 = vector.broadcast %97 : vector<4x8x1xf32> to vector<4x8x8xf32>
    %99 = arith.mulf %96#2, %98 : vector<4x8x8xf32>
    %100 = vector.extract_strided_slice %99 {offsets = [0, 0, 0], sizes = [1, 8, 8], strides = [1, 1, 1]} : vector<4x8x8xf32> to vector<1x8x8xf32>
    %101 = vector.shape_cast %100 : vector<1x8x8xf32> to vector<8x8xf32>
    %102 = vector.extract_strided_slice %99 {offsets = [1, 0, 0], sizes = [1, 8, 8], strides = [1, 1, 1]} : vector<4x8x8xf32> to vector<1x8x8xf32>
    %103 = vector.shape_cast %102 : vector<1x8x8xf32> to vector<8x8xf32>
    %104 = vector.extract_strided_slice %99 {offsets = [2, 0, 0], sizes = [1, 8, 8], strides = [1, 1, 1]} : vector<4x8x8xf32> to vector<1x8x8xf32>
    %105 = vector.shape_cast %104 : vector<1x8x8xf32> to vector<8x8xf32>
    %106 = vector.extract_strided_slice %99 {offsets = [3, 0, 0], sizes = [1, 8, 8], strides = [1, 1, 1]} : vector<4x8x8xf32> to vector<1x8x8xf32>
    %107 = vector.shape_cast %106 : vector<1x8x8xf32> to vector<8x8xf32>
    %108 = tpu.concatenate %101, %103, %105, %107 in 1 : vector<8x8xf32>, vector<8x8xf32>, vector<8x8xf32>, vector<8x8xf32> -> vector<8x32xf32>
    %109 = arith.truncf %108 : vector<8x32xf32> to vector<8x32xbf16>
    %c0_36 = arith.constant 0 : index
    %c0_37 = arith.constant 0 : index
    %110 = vector.load %arg14[%c0_36, %c0_37] : memref<32x32xbf16, #tpu.memory_space<vmem>>, vector<32x32xbf16>
    %cst_38 = arith.constant dense<0.000000e+00> : vector<8x32xf32>
    %111 = tpu.matmul %109, %110, %cst_38 {dimension_numbers = #tpu.dot_dimension_numbers<[1], [0], [0], [1], [0, 0, 1, 1], [], []>} : vector<8x32xbf16>, vector<32x32xbf16>, vector<8x32xf32> -> vector<8x32xf32>
    %c0_39 = arith.constant 0 : index
    %c0_40 = arith.constant 0 : index
    %112 = vector.load %arg15[%c0_39, %c0_40] : memref<1x32xf32, #tpu.memory_space<vmem>>, vector<1x32xf32>
    %113 = vector.broadcast %112 : vector<1x32xf32> to vector<8x32xf32>
    %114 = arith.addf %111, %113 : vector<8x32xf32>
    %115 = arith.addf %75, %114 : vector<8x32xf32>
    %cst_41 = arith.constant dense<0.000000e+00> : vector<8xf32>
    %116 = vector.multi_reduction <add>, %115, %cst_41 [1] : vector<8x32xf32> to vector<8xf32>
    %117 = vector.shape_cast %116 : vector<8xf32> to vector<8x1xf32>
    %cst_42 = arith.constant 3.200000e+01 : f32
    %118 = vector.broadcast %cst_42 : f32 to vector<8x1xf32>
    %119 = arith.divf %117, %118 : vector<8x1xf32>
    %120 = vector.broadcast %119 : vector<8x1xf32> to vector<8x32xf32>
    %121 = arith.subf %115, %120 : vector<8x32xf32>
    %122 = arith.mulf %121, %121 : vector<8x32xf32>
    %cst_43 = arith.constant dense<0.000000e+00> : vector<8xf32>
    %123 = vector.multi_reduction <add>, %122, %cst_43 [1] : vector<8x32xf32> to vector<8xf32>
    %124 = vector.shape_cast %123 : vector<8xf32> to vector<8x1xf32>
    %cst_44 = arith.constant 3.200000e+01 : f32
    %125 = vector.broadcast %cst_44 : f32 to vector<8x1xf32>
    %126 = arith.divf %124, %125 : vector<8x1xf32>
    %127 = vector.broadcast %119 : vector<8x1xf32> to vector<8x32xf32>
    %128 = arith.subf %115, %127 : vector<8x32xf32>
    %cst_45 = arith.constant 9.99999997E-7 : f32
    %129 = vector.broadcast %cst_45 : f32 to vector<8x1xf32>
    %130 = arith.addf %126, %129 : vector<8x1xf32>
    %131 = math.rsqrt %130 : vector<8x1xf32>
    %132 = vector.broadcast %131 : vector<8x1xf32> to vector<8x32xf32>
    %133 = arith.mulf %128, %132 : vector<8x32xf32>
    %cst_46 = arith.constant 1.000000e+00 : f32
    %134 = vector.broadcast %cst_46 : f32 to vector<1x32xf32>
    %135 = arith.addf %134, %6 : vector<1x32xf32>
    %136 = vector.broadcast %135 : vector<1x32xf32> to vector<8x32xf32>
    %137 = arith.mulf %133, %136 : vector<8x32xf32>
    %138 = vector.broadcast %5 : vector<1x32xf32> to vector<8x32xf32>
    %139 = arith.addf %137, %138 : vector<8x32xf32>
    %140 = arith.truncf %139 : vector<8x32xf32> to vector<8x32xbf16>
    %c0_47 = arith.constant 0 : index
    %c0_48 = arith.constant 0 : index
    %141 = vector.load %arg16[%c0_47, %c0_48] : memref<32x128xbf16, #tpu.memory_space<vmem>>, vector<32x64xbf16>
    %cst_49 = arith.constant dense<0.000000e+00> : vector<8x64xf32>
    %142 = tpu.matmul %140, %141, %cst_49 {dimension_numbers = #tpu.dot_dimension_numbers<[1], [0], [0], [1], [0, 0, 1, 1], [], []>} : vector<8x32xbf16>, vector<32x64xbf16>, vector<8x64xf32> -> vector<8x64xf32>
    %c0_50 = arith.constant 0 : index
    %c0_51 = arith.constant 0 : index
    %143 = vector.load %arg17[%c0_50, %c0_51] : memref<1x128xf32, #tpu.memory_space<vmem>>, vector<1x64xf32>
    %144 = vector.broadcast %143 : vector<1x64xf32> to vector<8x64xf32>
    %145 = arith.addf %142, %144 : vector<8x64xf32>
    %cst_52 = arith.constant 5.000000e-01 : f32
    %146 = vector.broadcast %cst_52 : f32 to vector<8x64xf32>
    %147 = arith.mulf %146, %145 : vector<8x64xf32>
    %cst_53 = arith.constant 4.471500e-02 : f32
    %148 = vector.broadcast %cst_53 : f32 to vector<8x64xf32>
    %149 = arith.mulf %148, %145 : vector<8x64xf32>
    %150 = arith.mulf %149, %145 : vector<8x64xf32>
    %151 = arith.mulf %150, %145 : vector<8x64xf32>
    %152 = arith.addf %145, %151 : vector<8x64xf32>
    %cst_54 = arith.constant 0.797884583 : f32
    %153 = vector.broadcast %cst_54 : f32 to vector<8x64xf32>
    %154 = arith.mulf %153, %152 : vector<8x64xf32>
    %155 = math.tanh %154 : vector<8x64xf32>
    %cst_55 = arith.constant 1.000000e+00 : f32
    %156 = vector.broadcast %cst_55 : f32 to vector<8x64xf32>
    %157 = arith.addf %156, %155 : vector<8x64xf32>
    %158 = arith.mulf %147, %157 : vector<8x64xf32>
    %159 = arith.truncf %158 : vector<8x64xf32> to vector<8x64xbf16>
    %c0_56 = arith.constant 0 : index
    %c0_57 = arith.constant 0 : index
    %160 = vector.load %arg18[%c0_56, %c0_57] : memref<128x32xbf16, #tpu.memory_space<vmem>>, vector<64x32xbf16>
    %cst_58 = arith.constant dense<0.000000e+00> : vector<8x32xf32>
    %161 = tpu.matmul %159, %160, %cst_58 {dimension_numbers = #tpu.dot_dimension_numbers<[1], [0], [0], [1], [0, 0, 1, 1], [], []>} : vector<8x64xbf16>, vector<64x32xbf16>, vector<8x32xf32> -> vector<8x32xf32>
    %c0_59 = arith.constant 0 : index
    %c64 = arith.constant 64 : index
    %162 = vector.load %arg16[%c0_59, %c64] : memref<32x128xbf16, #tpu.memory_space<vmem>>, vector<32x64xbf16>
    %cst_60 = arith.constant dense<0.000000e+00> : vector<8x64xf32>
    %163 = tpu.matmul %140, %162, %cst_60 {dimension_numbers = #tpu.dot_dimension_numbers<[1], [0], [0], [1], [0, 0, 1, 1], [], []>} : vector<8x32xbf16>, vector<32x64xbf16>, vector<8x64xf32> -> vector<8x64xf32>
    %c0_61 = arith.constant 0 : index
    %c64_62 = arith.constant 64 : index
    %164 = vector.load %arg17[%c0_61, %c64_62] : memref<1x128xf32, #tpu.memory_space<vmem>>, vector<1x64xf32>
    %165 = vector.broadcast %164 : vector<1x64xf32> to vector<8x64xf32>
    %166 = arith.addf %163, %165 : vector<8x64xf32>
    %cst_63 = arith.constant 5.000000e-01 : f32
    %167 = vector.broadcast %cst_63 : f32 to vector<8x64xf32>
    %168 = arith.mulf %167, %166 : vector<8x64xf32>
    %cst_64 = arith.constant 4.471500e-02 : f32
    %169 = vector.broadcast %cst_64 : f32 to vector<8x64xf32>
    %170 = arith.mulf %169, %166 : vector<8x64xf32>
    %171 = arith.mulf %170, %166 : vector<8x64xf32>
    %172 = arith.mulf %171, %166 : vector<8x64xf32>
    %173 = arith.addf %166, %172 : vector<8x64xf32>
    %cst_65 = arith.constant 0.797884583 : f32
    %174 = vector.broadcast %cst_65 : f32 to vector<8x64xf32>
    %175 = arith.mulf %174, %173 : vector<8x64xf32>
    %176 = math.tanh %175 : vector<8x64xf32>
    %cst_66 = arith.constant 1.000000e+00 : f32
    %177 = vector.broadcast %cst_66 : f32 to vector<8x64xf32>
    %178 = arith.addf %177, %176 : vector<8x64xf32>
    %179 = arith.mulf %168, %178 : vector<8x64xf32>
    %180 = arith.truncf %179 : vector<8x64xf32> to vector<8x64xbf16>
    %c64_67 = arith.constant 64 : index
    %c0_68 = arith.constant 0 : index
    %181 = vector.load %arg18[%c64_67, %c0_68] : memref<128x32xbf16, #tpu.memory_space<vmem>>, vector<64x32xbf16>
    %cst_69 = arith.constant dense<0.000000e+00> : vector<8x32xf32>
    %182 = tpu.matmul %180, %181, %cst_69 {dimension_numbers = #tpu.dot_dimension_numbers<[1], [0], [0], [1], [0, 0, 1, 1], [], []>} : vector<8x64xbf16>, vector<64x32xbf16>, vector<8x32xf32> -> vector<8x32xf32>
    %183 = arith.addf %161, %182 : vector<8x32xf32>
    %c0_70 = arith.constant 0 : index
    %c0_71 = arith.constant 0 : index
    %184 = vector.load %arg19[%c0_70, %c0_71] : memref<1x32xf32, #tpu.memory_space<vmem>>, vector<1x32xf32>
    %185 = vector.broadcast %184 : vector<1x32xf32> to vector<8x32xf32>
    %186 = arith.addf %183, %185 : vector<8x32xf32>
    %187 = vector.broadcast %7 : vector<1x32xf32> to vector<8x32xf32>
    %188 = arith.mulf %187, %186 : vector<8x32xf32>
    %189 = arith.addf %115, %188 : vector<8x32xf32>
    %c0_72 = arith.constant 0 : index
    %c0_73 = arith.constant 0 : index
    %c0_74 = arith.constant 0 : index
    %190 = vector.load %arg20[%c0_72, %c0_73, %c0_74] : memref<1x8x32xf32, #tpu.memory_space<vmem>>, vector<1x8x32xf32>
    %191 = vector.shape_cast %190 : vector<1x8x32xf32> to vector<8x32xf32>
    %192 = vector.shape_cast %189 : vector<8x32xf32> to vector<1x8x32xf32>
    tpu.vector_store %arg20[%c0_72, %c0_73, %c0_74], %192 {strides = array<i32>} : memref<1x8x32xf32, #tpu.memory_space<vmem>>, vector<1x8x32xf32>,
    return
  }
  func.func @transform_0(%arg0: i32, %arg1: i32) -> (i32, i32, i32) {
    %c0_i32 = arith.constant 0 : i32
    %c0_i32_0 = arith.constant 0 : i32
    return %arg0, %arg1, %c0_i32 : i32, i32, i32
  }
  func.func @transform_1(%arg0: i32, %arg1: i32) -> (i32, i32, i32) {
    %c0_i32 = arith.constant 0 : i32
    %c0_i32_0 = arith.constant 0 : i32
    %c0_i32_1 = arith.constant 0 : i32
    return %arg0, %c0_i32, %c0_i32_0 : i32, i32, i32
  }
  func.func @transform_2(%arg0: i32, %arg1: i32) -> (i32, i32, i32, i32) {
    %c0_i32 = arith.constant 0 : i32
    %c0_i32_0 = arith.constant 0 : i32
    %c0_i32_1 = arith.constant 0 : i32
    %c0_i32_2 = arith.constant 0 : i32
    return %arg0, %c0_i32, %c0_i32_0, %c0_i32_1 : i32, i32, i32, i32
  }
  func.func @transform_3(%arg0: i32, %arg1: i32) -> (i32, i32, i32, i32) {
    %c0_i32 = arith.constant 0 : i32
    %c0_i32_0 = arith.constant 0 : i32
    %c0_i32_1 = arith.constant 0 : i32
    %c0_i32_2 = arith.constant 0 : i32
    return %arg0, %c0_i32, %c0_i32_0, %c0_i32_1 : i32, i32, i32, i32
  }
  func.func @transform_4(%arg0: i32, %arg1: i32) -> (i32, i32, i32, i32) {
    %c0_i32 = arith.constant 0 : i32
    %c0_i32_0 = arith.constant 0 : i32
    %c0_i32_1 = arith.constant 0 : i32
    %c0_i32_2 = arith.constant 0 : i32
    return %arg0, %c0_i32, %c0_i32_0, %c0_i32_1 : i32, i32, i32, i32
  }
  func.func @transform_5(%arg0: i32, %arg1: i32) -> (i32, i32, i32, i32) {
    %c0_i32 = arith.constant 0 : i32
    %c0_i32_0 = arith.constant 0 : i32
    %c0_i32_1 = arith.constant 0 : i32
    %c0_i32_2 = arith.constant 0 : i32
    return %arg0, %c0_i32, %c0_i32_0, %c0_i32_1 : i32, i32, i32, i32
  }
  func.func @transform_6(%arg0: i32, %arg1: i32) -> (i32, i32) {
    %c0_i32 = arith.constant 0 : i32
    %c0_i32_0 = arith.constant 0 : i32
    %c0_i32_1 = arith.constant 0 : i32
    return %c0_i32, %c0_i32_0 : i32, i32
  }
  func.func @transform_7(%arg0: i32, %arg1: i32) -> (i32, i32) {
    %c0_i32 = arith.constant 0 : i32
    %c0_i32_0 = arith.constant 0 : i32
    %c0_i32_1 = arith.constant 0 : i32
    return %c0_i32, %c0_i32_0 : i32, i32
  }
  func.func @transform_8(%arg0: i32, %arg1: i32) -> (i32, i32) {
    %c0_i32 = arith.constant 0 : i32
    %c0_i32_0 = arith.constant 0 : i32
    %c0_i32_1 = arith.constant 0 : i32
    return %c0_i32, %c0_i32_0 : i32, i32
  }
  func.func @transform_9(%arg0: i32, %arg1: i32) -> (i32, i32) {
    %c0_i32 = arith.constant 0 : i32
    %c0_i32_0 = arith.constant 0 : i32
    %c0_i32_1 = arith.constant 0 : i32
    return %c0_i32, %c0_i32_0 : i32, i32
  }
  func.func @transform_10(%arg0: i32, %arg1: i32) -> (i32, i32) {
    %c0_i32 = arith.constant 0 : i32
    %c0_i32_0 = arith.constant 0 : i32
    %c0_i32_1 = arith.constant 0 : i32
    return %c0_i32, %c0_i32_0 : i32, i32
  }
  func.func @transform_11(%arg0: i32, %arg1: i32) -> (i32, i32) {
    %c0_i32 = arith.constant 0 : i32
    %c0_i32_0 = arith.constant 0 : i32
    %c0_i32_1 = arith.constant 0 : i32
    return %c0_i32, %c0_i32_0 : i32, i32
  }
  func.func @transform_12(%arg0: i32, %arg1: i32) -> (i32, i32) {
    %c0_i32 = arith.constant 0 : i32
    %c0_i32_0 = arith.constant 0 : i32
    %c0_i32_1 = arith.constant 0 : i32
    return %c0_i32, %c0_i32_0 : i32, i32
  }
  func.func @transform_13(%arg0: i32, %arg1: i32) -> (i32, i32) {
    %c0_i32 = arith.constant 0 : i32
    %c0_i32_0 = arith.constant 0 : i32
    %c0_i32_1 = arith.constant 0 : i32
    return %c0_i32, %c0_i32_0 : i32, i32
  }
  func.func @transform_14(%arg0: i32, %arg1: i32) -> (i32, i32) {
    %c0_i32 = arith.constant 0 : i32
    %c0_i32_0 = arith.constant 0 : i32
    %c0_i32_1 = arith.constant 0 : i32
    return %c0_i32, %c0_i32_0 : i32, i32
  }
  func.func @transform_15(%arg0: i32, %arg1: i32) -> (i32, i32) {
    %c0_i32 = arith.constant 0 : i32
    %c0_i32_0 = arith.constant 0 : i32
    %c0_i32_1 = arith.constant 0 : i32
    return %c0_i32, %c0_i32_0 : i32, i32
  }
  func.func @transform_16(%arg0: i32, %arg1: i32) -> (i32, i32) {
    %c0_i32 = arith.constant 0 : i32
    %c0_i32_0 = arith.constant 0 : i32
    %c0_i32_1 = arith.constant 0 : i32
    return %c0_i32, %c0_i32_0 : i32, i32
  }
  func.func @transform_17(%arg0: i32, %arg1: i32) -> (i32, i32) {
    %c0_i32 = arith.constant 0 : i32
    %c0_i32_0 = arith.constant 0 : i32
    %c0_i32_1 = arith.constant 0 : i32
    return %c0_i32, %c0_i32_0 : i32, i32
  }
  func.func @transform_18(%arg0: i32, %arg1: i32) -> (i32, i32, i32) {
    %c0_i32 = arith.constant 0 : i32
    %c0_i32_0 = arith.constant 0 : i32
    return %arg0, %arg1, %c0_i32 : i32, i32, i32
  }
}

</mosaic_0001>

<bundles_post_ra>
// kernel: tpu_custom_call.1
= control target key start
LH: loop header
LB: loop body
LE: loop exit
PB: predicated region body
PF: predicated region fallthrough
CT: control target
= control target key end

     0   :  { %s4511_s0 = inlined_call_operand.vmem [shape: f32[2,16,32], index: 0, kind: input, shape index: {}]   ;;  %s4512_s1 = inlined_call_operand.vmem [shape: f32[2,6,32], index: 1, kind: input, shape index: {}]   ;;  %s4513_s2 = inlined_call_operand.vmem [shape: bf16[2,4,16,8], index: 2, kind: input, shape index: {}]   ;;  %s4514_s3 = inlined_call_operand.vmem [shape: bf16[2,4,16,8], index: 3, kind: input, shape index: {}]   ;;  %s4515_s4 = inlined_call_operand.vmem [shape: bf16[2,4,16,8], index: 4, kind: input, shape index: {}]   ;;  %s4516_s5 = inlined_call_operand.vmem [shape: bf16[2,4,16,8], index: 5, kind: input, shape index: {}]   ;;  %s4517_s6 = inlined_call_operand.vmem [shape: bf16[32,32], index: 6, kind: input, shape index: {}]   ;;  %s4518_s7 = inlined_call_operand.vmem [shape: f32[1,32], index: 7, kind: input, shape index: {}]   ;;  %s4519_s8 = inlined_call_operand.vmem [shape: bf16[32,32], index: 8, kind: input, shape index: {}]   ;;  %s4520_s9 = inlined_call_operand.vmem [shape: f32[1,32], index: 9, kind: input, shape index: {}]   ;;  %s4521_s10 = inlined_call_operand.vmem [shape: bf16[32,32], index: 10, kind: input, shape index: {}]   ;;  %s4522_s11 = inlined_call_operand.vmem [shape: f32[1,32], index: 11, kind: input, shape index: {}]   ;;  %s4523_s12 = inlined_call_operand.vmem [shape: bf16[32,32], index: 12, kind: input, shape index: {}]   ;;  %s4524_s13 = inlined_call_operand.vmem [shape: f32[1,32], index: 13, kind: input, shape index: {}]   ;;  %s4525_s14 = inlined_call_operand.vmem [shape: bf16[32,128], index: 14, kind: input, shape index: {}]   ;;  %s4526_s15 = inlined_call_operand.vmem [shape: f32[1,128], index: 15, kind: input, shape index: {}]   ;;  %s4527_s16 = inlined_call_operand.vmem [shape: bf16[128,32], index: 16, kind: input, shape index: {}]   ;;  %s4528_s17 = inlined_call_operand.vmem [shape: f32[1,32], index: 17, kind: input, shape index: {}]   ;;  %s4529_s18 = inlined_call_operand.hbm [shape: f32[2,16,32], index: 18, kind: output, shape index: {}]  }
   0x1   :  { %4546 = sst [smem:[#allocation17_spill]] %s4511_s0 }
   0x2   :  { %4547 = sst [smem:[#allocation18_spill]] %s4512_s1 }
   0x3   :  { %4548 = sst [smem:[#allocation19_spill]] %s4513_s2 }
   0x4   :  { %4549 = sst [smem:[#allocation20_spill]] %s4524_s13 }
   0x5   :  { %4550 = sst [smem:[#allocation21_spill]] %s4525_s14 }
   0x6   :  { %4551 = sst [smem:[#allocation22_spill]] %s4526_s15 }
   0x7   :  { %4552 = sst [smem:[#allocation23_spill]] %s4527_s16 }
   0x8   :  { %4553 = sst [smem:[#allocation24_spill]] %s4528_s17 }
   0x9   :  { %4554 = sst [smem:[#allocation25_spill]] %s4529_s18 }
   0xa   :  { %23 = vsyncpa [#allocation3], 0 }
   0xb   :  { %25 = vsyncpa [#allocation3 + $0x1], 0  ;;  %s3682_s27 = smov 0   ;;  %s3684_s28 = smov 0  }
   0xc   :  { %s3686_s29 = smov 0   ;;  %s3688_s30 = smov 0  }
   0xd   :  { %s3690_s0 = smov 0   ;;  %s3692_s19 = smov 0  }
   0xe   :  { %s3694_s1 = smov 0   ;;  %s3696_s20 = smov 0  }
   0xf LB: > { %4555 = sst [smem:[#allocation5_spill]] %s3439_s27  ;;  %s2595_s21 = sadd.s32 4294967295, %s3467_s20   ;;  %s3467_s20 = sphi %s3696_s20, %s31_s20   ;;  %s3463_s1 = sphi %s3694_s1, %s4620_s1   ;;  %s3459_s19 = sphi %s3692_s19, %s4623_s19   ;;  %s3455_s0 = sphi %s3690_s0, %s4618_s0   ;;  %s3451_s30 = sphi %s3688_s30, %s4617_s30   ;;  %s3447_s29 = sphi %s3686_s29, %s4616_s29   ;;  %s3443_s28 = sphi %s3684_s28, %s4622_s28   ;;  %s3439_s27 = sphi %s3682_s27, %s4621_s27  }
  0x10   : > { %4556 = sst [smem:[#allocation6_spill]] %s3447_s29  ;;  %s2596_s22 = sadd.s32 4294967294, %s3467_s20  }
  0x11   : > { %4557 = sst [smem:[#allocation7_spill]] %s3451_s30  ;;  %s40_s2 = sadd.s32 1, %s3459_s19 }
  0x12   : > { %4558 = sst [smem:[#allocation8_spill]] %s3455_s0  ;;  %p41_p0 = scmp.ge.s32.totalorder %s40_s2, 2 }
  0x13   : > { %4559 = sst [smem:[#allocation9_spill]] %s3459_s19  ;;  %s43_s23 = sadd.s32 1, %s3463_s1 }
  0x14   : > { %4560 = sst [smem:[#allocation10_spill]] %s3463_s1  ;;  %p472_p1 = scmp.ne.s32.totalorder %s3447_s29, %s3443_s28 }
  0x15   : > { %4561 = sst [smem:[#allocation11_spill]] %s3467_s20  ;;  %p473_p2 = scmp.eq.s32.totalorder %s2595_s21, 3 }
  0x16   : > { %s4625_s2 = smov (%p41_p0, %s40_s2), 0  ;;  %s4627_s23 = smov (!%p41_p0, %s43_s23), %s3463_s1 }
  0x17   : > { %4562 = sst [smem:[#allocation12_spill]] %s4625_s2  ;;  %s458_s24 = ssub.s32 %s3459_s19, %s4625_s2 }
  0x18   : > { %p3733_p3 = por %p473_p2, %p472_p1  ;;  %p45_p4 = scmp.ge.s32.totalorder %s4627_s23, 2 }
  0x19   : > { %p478_p5 = scmp.ne.s32.totalorder %s3443_s28, %s3439_s27  ;;  %p479_p6 = scmp.eq.s32.totalorder %s2596_s22, 3 }
  0x1a   : > { %s4563_s25 = scalar_select %p3733_p3, 1, 0 }
  0x1b   : > { %p2599_p7 = scmp.ge.s32.totalorder %s3467_s20, 1  ;;  %s4629_s23 = smov (%p45_p4, %s4627_s23), 0 }
  0x1c   : > { %4564 = sst [smem:[#allocation13_spill]] %s4563_s25  ;;  %p3742_p8 = por %p479_p6, %p478_p5 }
  0x1d   : > { %4565 = sst [smem:[#allocation14_spill]] %s4629_s23  ;;  %p583_p9 = scmp.lt.s32.totalorder %s3467_s20, 5 }
  0x1e   : > { %s4566_s26 = scalar_select %p3742_p8, 1, 0 }
  0x1f   : > { %s457_s21 = ssub.s32 %s3463_s1, %s4629_s23  ;;  %s462_s18 = sadd.s32 1, %s3447_s29 }
  0x20   : > { %4567 = sst [smem:[#allocation15_spill]] %s4566_s26  ;;  %s459_s17 = sor.u32 %s458_s24, %s457_s21 }
  0x21   : > { %p584_p10 = pnand %p2599_p7, %p583_p9  ;;  %p460_p11 = scmp.eq.s32.totalorder %s459_s17, 0 }
  0x22   : > { %p664_p12 = scmp.lt.s32.totalorder (!%p584_p10), %s3455_s0, 1  ;;  %p666_p13 = scmp.lt.s32.totalorder (!%p584_p10), %s3451_s30, 1  ;;  %vm699_vm0 = vcmask (!%p584_p10), 261120   ;;  %v3195_v7 = vld [vmem:[%s4517_s6] sm:$0xff] (!%p584_p10)   ;;  %v3573_v8 = vmov (!%p584_p10), 0.0   ;;  %vm3574_vm1 = vmmov (!%p584_p10), 0   ;;  %v715_v12 = vlaneseq (!%p584_p10) }
  0x23   : > { %s3751_s2 = scalar_select %p460_p11, %s3447_s29, %s462_s18  }
  0x24   : > { %587 = sbr.rel (%p584_p10) target bundleno = 3732 (0xe94), region = 92  ;;  %s4569_s21 = sld [smem:[#allocation19_spill]] (!%p584_p10)  ;;  %2735 = vmatprep.subr.bf16.mxu0 (!%p584_p10), %v3573_v8  ;;  %2739 = vmatprep.mubr.msk.bf16.mxu0 (!%p584_p10), %vm3574_vm1, %v3573_v8  ;;  %v3196_v9 = vld [vmem:[%s4517_s6 + $0x8] sm:$0xff] (!%p584_p10)   ;;  %v3807_v14 = vshrl.u32 (!%p584_p10), %v715_v12, 7  ;;  %v2612_v26 = vld [vmem:[%s4518_s7] ss:$0 sm:$0xff] (!%p584_p10) }
  0x25   : > { %4568 = sst [smem:[#allocation16_spill]] %s3751_s2  ;;  %s661_s14 = sand.u32 (!%p584_p10), 1, %s3443_s28   ;;  %2736 = vmatpush3.bf16.msra.mxu0 (!%p584_p10), %v3195_v7  ;;  %v3845_v39 = vmov (!%p584_p10), 0.0   ;;  %v3847_v40 = vmov (!%p584_p10), 0.0   ;;  %v3849_v41 = vmov (!%p584_p10), 0.0   ;;  %v3851_v42 = vmov (!%p584_p10), 0.0  }
  0x26   : > { %s3794_s13 = sshll.u32 (!%p584_p10), %s661_s14, 3  ;;  %2737 = vmatprep.subr.bf16.mxu0 (!%p584_p10), %v3573_v8  ;;  %s4571_s25 = sld [smem:[#allocation18_spill]] (!%p584_p10)  ;;  %v717_v17 = vsub.s32 (!%p584_p10), 1, %v3807_v14  ;;  %v722_v18 = vsub.s32 (!%p584_p10), 0, %v3807_v14  ;;  %v3853_v43 = vmov (!%p584_p10), 0.0   ;;  %v3855_v44 = vmov (!%p584_p10), 0.0  }
  0x27   : > { %s3577_s15 = smov (!%p584_p10), 112   ;;  %s663_s27 = scalar_lea.vmem (!%p584_p10), [#allocation2], %s3794_s13  ;;  %v3857_v45 = vmov (!%p584_p10), 0.0   ;;  %v3859_v46 = vmov (!%p584_p10), 0.0   ;;  %v3861_v47 = vmov (!%p584_p10), -inf   ;;  %v3863_v48 = vmov (!%p584_p10), -inf  }
  0x28   : > { %v3865_v49 = vmov (!%p584_p10), -inf   ;;  %v3867_v50 = vmov (!%p584_p10), -inf  }
  0x29   : > { %2738 = vmatpush3.bf16.msra.mxu0 (!%p584_p10), %v3196_v9 }
  0x2b   : > { %s3756_s22 = scalar_select %p664_p12, %s3455_s0, 1 }
  0x2c   : > { %s667_s19 = scalar_select %p666_p13, %s3451_s30, 1 }
  0x2d   : > { %s2601_s26 = sshll.u32 %s3756_s22, 1  ;;  %s3761_s23 = sshll.u32 %s3756_s22, 5 }
  0x2e   : > { %s669_s17 = sadd.s32 %s2601_s26, %s667_s19  ;;  %s680_s1 = scalar_lea.vmem %s4569_s21, %s3761_s23 }
  0x2f   : > { %s2602_s2 = sshll.u32 %s669_s17, 3  ;;  %s685_s20 = scalar_lea.vmem %s4514_s3, %s3761_s23 }
  0x30   : > { %s4570_s0 = sld [smem:[#allocation17_spill]]  ;;  %s690_s19 = scalar_lea.vmem %s4515_s4, %s3761_s23 }
  0x31   : > { %s695_s18 = scalar_lea.vmem %s4516_s5, %s3761_s23  ;;  %s2603_s30 = sshll.u32 %s3756_s22, 3 }
  0x32   : > { %s675_s17 = scalar_lea.vmem %s4571_s25, %s2603_s30  ;;  %s3575_s21 = smov 104  }
  0x33   : > { %v3809_v15 = vld [vmem:[%s675_s17] sm:$0x3f]  ;;  %s3576_s26 = smov 120  }
  0x34   : > { %v3812_v16 = vadd.f32 1.0, %v3809_v15  ;;  %v723_v22 = vrot.slane %v3809_v15, %v722_v18 }
  0x36   : > { %s671_s16 = scalar_lea.vmem %s4570_s0, %s2602_s2  ;;  %v718_v19 = vrot.slane %v3812_v16, %v717_v17 }
  0x37   : > { %v3782_v0 = vld [vmem:[%s671_s16] sm:$0xff]  ;;  %s3869_s16 = smov 0  }
  0x38   : > { %v700_v1 = vsel %vm699_vm0, %v3782_v0, 0.0 }
  0x39   : > { %701 = vadd.xlane.f32.xlu0 %v700_v1 }
  0xc6   : > { %v702_v2 = vpop.xlane.xlu0 %701 }
  0xc7   : > { %v704_v3 = vmul.f32 0.03125, %v702_v2 }
  0xc9   : > { %v705_v4 = vsub.f32 %v3782_v0, %v704_v3 }
  0xcb   : > { %v706_v5 = vmul.f32 %v705_v4, %v705_v4 }
  0xcd   : > { %v707_v6 = vsel %vm699_vm0, %v706_v5, 0.0 }
  0xce   : > { %708 = vadd.xlane.f32.xlu0 %v707_v6 }
 0x15b   : > { %v709_v10 = vpop.xlane.xlu0 %708 }
 0x15c   : > { %v710_v11 = vmul.f32 0.03125, %v709_v10 }
 0x15e   : > { %v711_v13 = vadd.f32 1e-06, %v710_v11 }
 0x160   : > { %3197 = vrsqrt.f32 %v711_v13 }
 0x16a   : > { %v3198_v20 = vpop.eup %3197 }
 0x16b   : > { %v713_v21 = vmul.f32 %v3198_v20, %v705_v4 }
 0x16d   : > { %v719_v23 = vmul.f32 %v718_v19, %v713_v21 }
 0x16f   : > { %v724_v24 = vadd.f32 %v723_v22, %v719_v23 }
 0x171   : > { %v725_v25 = vpack.c.bf16 %v724_v24, %v724_v24 }
 0x173   : > { %2740 = vmatmul.mubr.msk.bf16.vlgmr.msra.gmra.mrb[0].mxu0 %vm699_vm0, %v725_v25 }
 0x246   : > { %v786_v27 = vpop.f32.mrb[0].mxu0 }
 0x247   : > { %v3822_v28 = vadd.f32 %v2612_v26, %v786_v27  ;;  %v2741_v29 = vpop.f32.mrb[1].mxu0 }
 0x248   : > { %v789_v30 = vpop.f32.mrb[2].mxu0 }
 0x249   : > { %v802_v31 = vpack.c.bf16 %v3822_v28, %v3822_v28  ;;  %799 = vrot.lane.b32.xlu0 %v3822_v28, %s3575_s21  ;;  %793 = vrot.lane.b32.xlu1 %v3822_v28, %s3576_s26  ;;  %v2742_v32 = vpop.f32.mrb[3].mxu0 }
 0x24d   : > { %796 = vrot.lane.b32.xlu1 %v3822_v28, %s3577_s15 }
 0x2bb   : > { %v3832_v33 = vpop.permute.xlu0 %799  ;;  %v3834_v34 = vpop.permute.xlu1 %793 }
 0x2bc   : > { %v805_v35 = vpack.c.bf16 %v3832_v33, %v3832_v33  ;;  %v803_v36 = vpack.c.bf16 %v3834_v34, %v3834_v34 }
 0x2bf   : > { %v3840_v37 = vpop.permute.xlu1 %796 }
 0x2c0   : > { %v804_v38 = vpack.c.bf16 %v3840_v37, %v3840_v37 }
 0x2c1 LB: >> { %v3578_v51 = vmov 0.0   ;;  %s2616_s29 = sshll.u32 %s3519_s16, 3  ;;  %vm3579_vm2 = vmmov 0   ;;  %vm839_vm3 = vcmask 64512   ;;  %vm1095_vm4 = vcmask 1043456   ;;  %s811_s16 = sadd.s32 1, %s3519_s16   ;;  %s3519_s16 = sphi %s3869_s16, %s811_s16   ;;  %v3515_v50 = vphi %v3867_v50, %v4587_v50   ;;  %v3511_v49 = vphi %v3865_v49, %v4586_v49   ;;  %v3507_v48 = vphi %v3863_v48, %v4585_v48   ;;  %v3503_v47 = vphi %v3861_v47, %v4584_v47   ;;  %v3499_v46 = vphi %v3859_v46, %v4583_v46   ;;  %v3495_v45 = vphi %v3857_v45, %v4582_v45   ;;  %v3491_v44 = vphi %v3855_v44, %v4581_v44   ;;  %v3487_v43 = vphi %v3853_v43, %v4580_v43   ;;  %v3483_v42 = vphi %v3851_v42, %v4579_v42   ;;  %v3479_v41 = vphi %v3849_v41, %v4578_v41   ;;  %v3475_v40 = vphi %v3847_v40, %v4577_v40   ;;  %v3471_v39 = vphi %v3845_v39, %v4576_v39  }
 0x2c2   : >> { %2743 = vmatprep.subr.bf16.mxu0 %v3578_v51  ;;  %2749 = vmatprep.subr.bf16.mxu1 %v3578_v51  ;;  %s3917_s30 = sshra.s32 %s2616_s29, 3  ;;  %p4025_p0 = scmp.ge.s32.totalorder %s811_s16, 2  }
 0x2c3   : >> { %2745 = vmatprep.mubr.msk.bf16.mxu0 %vm3579_vm2, %v3578_v51  ;;  %2751 = vmatprep.mubr.msk.bf16.mxu1 %vm3579_vm2, %v3578_v51  ;;  %s2617_s0 = sshll.u32 %s3917_s30, 2  ;;  %v3216_v28 = vld [vmem:[%s4519_s8 + $0x8] sm:$0xff] (%p4025_p0)   ;;  %vm1303_vm5 = vcmask (%p4025_p0), 130048   ;;  %vm1305_vm6 = vcmask (%p4025_p0), 195584  }
 0x2c4   : >> { %s828_s22 = scalar_lea.vmem %s680_s1, %s2617_s0  ;;  %s834_s2 = scalar_lea.vmem %s685_s20, %s2617_s0 }
 0x2c5   : >> { %v829_v52 = vld [vmem:[%s828_s22] sm:$0xf]  ;;  %v830_v53 = vld [vmem:[%s828_s22 + $0x8] sm:$0xf]  ;;  %v831_v56 = vld [vmem:[%s828_s22 + $0x10] sm:$0xf] }
 0x2c6   : >> { %v844_v54 = vsel %vm839_vm3, %v829_v52, 0  ;;  %v890_v55 = vsel %vm839_vm3, %v830_v53, 0  ;;  %v832_v57 = vld [vmem:[%s828_s22 + $0x18] sm:$0xf]  ;;  %v936_v58 = vsel %vm839_vm3, %v831_v56, 0  ;;  %s3580_s1 = smov (%p4025_p0), 8  }
 0x2c7   : >> { %2744 = vmatpush3.bf16.xpose.msra.mxu0 %v844_v54  ;;  %2750 = vmatpush3.bf16.xpose.msra.mxu1 %v890_v55  ;;  %v982_v59 = vsel %vm839_vm3, %v832_v57, 0  ;;  %v835_v21 = vld [vmem:[%s834_s2] sm:$0xf]  ;;  %v836_v23 = vld [vmem:[%s834_s2 + $0x8] sm:$0xf]  ;;  %s3581_s20 = smov (%p4025_p0), 24  }
 0x2c8   : >> { %2755 = vmatprep.subr.bf16.mxu0 %v3578_v51  ;;  %2761 = vmatprep.subr.bf16.mxu1 %v3578_v51  ;;  %v1097_v22 = vsel %vm1095_vm4, %v835_v21, 0  ;;  %v1143_v24 = vsel %vm1095_vm4, %v836_v23, 0  ;;  %v837_v25 = vld [vmem:[%s834_s2 + $0x10] sm:$0xf]  ;;  %v838_v27 = vld [vmem:[%s834_s2 + $0x18] sm:$0xf] }
 0x2c9   : >> { %v1189_v26 = vsel %vm1095_vm4, %v837_v25, 0  ;;  %v1235_v29 = vsel %vm1095_vm4, %v838_v27, 0  ;;  %s3582_s22 = smov (%p4025_p0), 16  }
 0x2ce   : >> { %2746 = vmatmul.mubr.msk.bf16.vlgmr.msra.gmra.mrb[0].mxu0 %vm839_vm3, %v802_v31  ;;  %2752 = vmatmul.mubr.msk.bf16.vlgmr.msra.gmra.mrb[0].mxu1 %vm839_vm3, %v803_v36 }
 0x2cf   : >> { %2756 = vmatpush3.bf16.xpose.msra.mxu0 %v936_v58  ;;  %2762 = vmatpush3.bf16.xpose.msra.mxu1 %v982_v59 }
 0x2d0   : >> { %2757 = vmatprep.mubr.msk.bf16.mxu0 %vm3579_vm2, %v3578_v51  ;;  %2763 = vmatprep.mubr.msk.bf16.mxu1 %vm3579_vm2, %v3578_v51 }
 0x2d1   : >> { %2767 = vmatprep.subr.bf16.mxu0 %v3578_v51  ;;  %2773 = vmatprep.subr.bf16.mxu1 %v3578_v51 }
 0x2d6   : >> { %2758 = vmatmul.mubr.msk.bf16.vlgmr.msra.gmra.mrb[4].mxu0 %vm839_vm3, %v804_v38  ;;  %2764 = vmatmul.mubr.msk.bf16.vlgmr.msra.gmra.mrb[4].mxu1 %vm839_vm3, %v805_v35 }
 0x2d7   : >> { %2769 = vmatprep.mubr.msk.bf16.mxu0 %vm3579_vm2, %v3578_v51  ;;  %2775 = vmatprep.mubr.msk.bf16.mxu1 %vm3579_vm2, %v3578_v51 }
 0x2d8   : >> { %2768 = vmatpush3.bf16.msra.mxu0 %v1097_v22  ;;  %2774 = vmatpush3.bf16.msra.mxu1 %v1143_v24 }
 0x2d9   : >> { %2779 = vmatprep.subr.bf16.mxu0 %v3578_v51  ;;  %2785 = vmatprep.subr.bf16.mxu1 %v3578_v51 }
 0x3a1   : >> { %v880_v60 = vpop.f32.mrb[0].mxu0  ;;  %v926_v61 = vpop.f32.mrb[0].mxu1 }
 0x3a2   : >> { %v2747_v62 = vpop.f32.mrb[1].mxu0  ;;  %v1024_v63 = vsel %vm839_vm3, %v880_v60, -inf  ;;  %v2753_v1 = vpop.f32.mrb[1].mxu1  ;;  %v1027_v6 = vsel %vm839_vm3, %v926_v61, -inf }
 0x3a3   : >> { %1025 = vmax.xlane.f32.xlu0 %v1024_v63  ;;  %v883_v2 = vpop.f32.mrb[2].mxu0  ;;  %v929_v3 = vpop.f32.mrb[2].mxu1 }
 0x3a4   : >> { %v2748_v4 = vpop.f32.mrb[3].mxu0  ;;  %v2754_v5 = vpop.f32.mrb[3].mxu1 }
 0x3a7   : >> { %1028 = vmax.xlane.f32.xlu0 %v1027_v6 }
 0x3a9   : >> { %v972_v7 = vpop.f32.mrb[4].mxu0  ;;  %v1018_v9 = vpop.f32.mrb[4].mxu1 }
 0x3aa   : >> { %v2759_v10 = vpop.f32.mrb[5].mxu0  ;;  %v1030_v11 = vsel %vm839_vm3, %v972_v7, -inf  ;;  %v2765_v12 = vpop.f32.mrb[5].mxu1  ;;  %v1033_v20 = vsel %vm839_vm3, %v1018_v9, -inf }
 0x3ab   : >> { %1031 = vmax.xlane.f32.xlu1 %v1030_v11  ;;  %v975_v13 = vpop.f32.mrb[6].mxu0  ;;  %v1021_v17 = vpop.f32.mrb[6].mxu1 }
 0x3ac   : >> { %v2760_v18 = vpop.f32.mrb[7].mxu0  ;;  %v2766_v19 = vpop.f32.mrb[7].mxu1 }
 0x3af   : >> { %1034 = vmax.xlane.f32.xlu1 %v1033_v20 }
 0x430   : >> { %v1026_v30 = vpop.xlane.xlu0 %1025 }
 0x431   : >> { %v3977_v32 = vmax.f32 %v3515_v50, %v1026_v30  }
 0x433   : >> { %v1040_v52 = vsub.f32 %v3515_v50, %v3977_v32  ;;  %v1052_v53 = vsub.f32 %v880_v60, %v3977_v32 }
 0x434   : >> { %v1029_v54 = vpop.xlane.xlu0 %1028 }
 0x435   : >> { %v1056_v55 = vmul.f32 1.442695, %v1052_v53  ;;  %v3983_v56 = vmax.f32 %v3511_v49, %v1029_v54   ;;  %v1044_v19 = vmul.f32 1.442695, %v1040_v52 }
 0x437   : >> { %v1041_v57 = vsub.f32 %v3511_v49, %v3983_v56  ;;  %v1053_v58 = vsub.f32 %v926_v61, %v3983_v56  ;;  %3199 = vpow2.f32 %v1056_v55 }
 0x438   : >> { %v1032_v59 = vpop.xlane.xlu1 %1031 }
 0x439   : >> { %v1058_v62 = vmul.f32 1.442695, %v1053_v58  ;;  %v3989_v63 = vmax.f32 %v3507_v48, %v1032_v59   ;;  %v1046_v20 = vmul.f32 1.442695, %v1041_v57 }
 0x43b   : >> { %v1042_v50 = vsub.f32 %v3507_v48, %v3989_v63  ;;  %v1054_v60 = vsub.f32 %v972_v7, %v3989_v63  ;;  %3201 = vpow2.f32 %v1058_v62 }
 0x43c   : >> { %v1035_v1 = vpop.xlane.xlu1 %1034 }
 0x43d   : >> { %v1060_v2 = vmul.f32 1.442695, %v1054_v60  ;;  %v3995_v3 = vmax.f32 %v3503_v47, %v1035_v1   ;;  %v1048_v21 = vmul.f32 1.442695, %v1042_v50 }
 0x43f   : >> { %v1043_v49 = vsub.f32 %v3503_v47, %v3995_v3  ;;  %v1055_v61 = vsub.f32 %v1018_v9, %v3995_v3  ;;  %3203 = vpow2.f32 %v1060_v2 }
 0x441   : >> { %v1062_v4 = vmul.f32 1.442695, %v1055_v61  ;;  %v3200_v5 = vpop.eup %3199 }
 0x442   : >> { %v1068_v6 = vsel %vm839_vm3, %v3200_v5, 0.0  ;;  %v1088_v10 = vpack.c.bf16 %v3200_v5, %v3200_v5 }
 0x443   : >> { %3205 = vpow2.f32 %v1062_v4  ;;  %1069 = vadd.xlane.f32.xlu0 %v1068_v6 }
 0x444   : >> { %2770 = vmatmul.mubr.msk.bf16.vlgmr.msra.gmra.mrb[8].mxu0 %vm839_vm3, %v1088_v10  ;;  %3207 = vpow2.f32 %v1044_v19 }
 0x445   : >> { %v3202_v48 = vpop.eup %3201  ;;  %2780 = vmatpush3.bf16.msra.mxu0 %v1189_v26  ;;  %2781 = vmatprep.mubr.msk.bf16.mxu0 %vm3579_vm2, %v3578_v51  ;;  %3209 = vpow2.f32 %v1046_v20 }
 0x446   : >> { %v1071_v7 = vsel %vm839_vm3, %v3202_v48, 0.0  ;;  %v1089_v47 = vpack.c.bf16 %v3202_v48, %v3202_v48  ;;  %3211 = vpow2.f32 %v1048_v21  ;;  %2791 = vmatprep.subr.bf16.mxu0 (%p4025_p0), %v3573_v8  ;;  %v3217_v21 = vld [vmem:[%s4521_s10] sm:$0xff] (%p4025_p0)  }
 0x447   : >> { %1072 = vadd.xlane.f32.xlu1 %v1071_v7 }
 0x448   : >> { %2776 = vmatmul.mubr.msk.bf16.vlgmr.msra.gmra.mrb[8].mxu1 %vm839_vm3, %v1089_v47 }
 0x449   : >> { %v3204_v9 = vpop.eup %3203  ;;  %2786 = vmatpush3.bf16.msra.mxu1 %v1235_v29  ;;  %2787 = vmatprep.mubr.msk.bf16.mxu1 %vm3579_vm2, %v3578_v51  ;;  %v1050_v51 = vmul.f32 1.442695, %v1043_v49 }
 0x44a   : >> { %v1074_v11 = vsel %vm839_vm3, %v3204_v9, 0.0  ;;  %v1090_v12 = vpack.c.bf16 %v3204_v9, %v3204_v9  ;;  %2799 = vmatprep.subr.bf16.mxu1 (%p4025_p0), %v3573_v8 }
 0x44b   : >> { %1075 = vadd.xlane.f32.xlu0 %v1074_v11  ;;  %3213 = vpow2.f32 %v1050_v51  ;;  %v3218_v51 = vld [vmem:[%s4521_s10 + $0x8] sm:$0xff] (%p4025_p0)  }
 0x44c   : >> { %2782 = vmatmul.mubr.msk.bf16.vlgmr.msra.gmra.mrb[12].mxu0 %vm839_vm3, %v1090_v12 }
 0x44d   : >> { %v3206_v13 = vpop.eup %3205  ;;  %2795 = vmatprep.mubr.msk.bf16.mxu0 (%p4025_p0), %vm3574_vm1, %v3573_v8 }
 0x44e   : >> { %v1077_v17 = vsel %vm839_vm3, %v3206_v13, 0.0  ;;  %v1091_v18 = vpack.c.bf16 %v3206_v13, %v3206_v13  ;;  %v3208_v22 = vpop.eup %3207 }
 0x44f   : >> { %1078 = vadd.xlane.f32.xlu1 %v1077_v17  ;;  %v1064_v23 = vmul.f32 %v3499_v46, %v3208_v22  ;;  %v3210_v24 = vpop.eup %3209  ;;  %v1084_v50 = vmul.f32 %v3483_v42, %v3208_v22  ;;  %v1376_v22 = vsub.s32 (%p4025_p0), 2, %v3807_v14 }
 0x450   : >> { %2788 = vmatmul.mubr.msk.bf16.vlgmr.msra.gmra.mrb[12].mxu1 %vm839_vm3, %v1091_v18  ;;  %v1065_v27 = vmul.f32 %v3495_v45, %v3210_v24  ;;  %v3212_v29 = vpop.eup %3211  ;;  %v1085_v49 = vmul.f32 %v3479_v41, %v3210_v24 }
 0x451   : >> { %v1066_v52 = vmul.f32 %v3491_v44, %v3212_v29  ;;  %v1086_v10 = vmul.f32 %v3475_v40, %v3212_v29  ;;  %2803 = vmatprep.mubr.msk.bf16.mxu1 (%p4025_p0), %vm3574_vm1, %v3573_v8  ;;  %2800 = vmatpush3.bf16.msra.mxu1 (%p4025_p0), %v3217_v21  ;;  %v1377_v24 = vrot.slane (%p4025_p0), %v3809_v15, %v1376_v22 }
 0x452   : > { %2801 = vmatprep.subr.bf16.mxu1 (%p4025_p0), %v3573_v8 }
 0x455   : >> { %v3214_v54 = vpop.eup %3213  ;;  %2802 = vmatpush3.bf16.msra.mxu1 (%p4025_p0), %v3218_v51 }
 0x456   : >> { %v1067_v58 = vmul.f32 %v3487_v43, %v3214_v54  ;;  %v1087_v11 = vmul.f32 %v3471_v39, %v3214_v54 }
 0x4d0   : >> { %v1070_v25 = vpop.xlane.xlu0 %1069 }
 0x4d1   : >> { %v4013_v46 = vadd.f32 %v1070_v25, %v1064_v23   ;;  %v2627_v23 = vld [vmem:[%s4520_s9] ss:$0 sm:$0xff] (%p4025_p0) }
 0x4d3   : >> { %v4573_v26 = vmov %v4013_v46 }
 0x4d4   : >> { %v1073_v30 = vpop.xlane.xlu1 %1072 }
 0x4d5   : >> { %v1081_v53 = vadd.f32 %v1073_v30, %v1065_v27  }
 0x4d7   : > { %3219 = vrcp.f32 (%p4025_p0), %v1081_v53 }
 0x4d8   : >> { %v1076_v55 = vpop.xlane.xlu0 %1075 }
 0x4d9   : >> { %v1082_v57 = vadd.f32 %v1076_v55, %v1066_v52   ;;  %v2631_v55 = vld [vmem:[%s4522_s11] ss:$0 sm:$0xff] (%p4025_p0) }
 0x4db   : > { %3221 = vrcp.f32 (%p4025_p0), %v1082_v57 }
 0x4dc   : >> { %v1079_v59 = vpop.xlane.xlu1 %1078 }
 0x4dd   : >> { %v1083_v62 = vadd.f32 %v1079_v59, %v1067_v58  }
 0x4df   : > { %3223 = vrcp.f32 (%p4025_p0), %v1083_v62 }
 0x4e0   : > { %3225 = vrcp.f32 (%p4025_p0), %v4573_v26 }
 0x4e1   : > { %v3220_v31 = vpop.eup (%p4025_p0), %3219 }
 0x4e5   : > { %v3222_v33 = vpop.eup (%p4025_p0), %3221 }
 0x4e9   : > { %v3224_v35 = vpop.eup (%p4025_p0), %3223 }
 0x4ea   : > { %v3226_v38 = vpop.eup (%p4025_p0), %3225 }
 0x517   : >> { %v1133_v60 = vpop.f32.mrb[8].mxu0 }
 0x518   : >> { %v4019_v42 = vadd.f32 %v1133_v60, %v1084_v50   ;;  %v2771_v46 = vpop.f32.mrb[9].mxu0  ;;  %v4587_v50 = vmov %v3977_v32 }
 0x519   : >> { %v1136_v2 = vpop.f32.mrb[10].mxu0  ;;  %v4583_v46 = vmov %v4573_v26 }
 0x51a   : >> { %v4574_v1 = vmov %v4019_v42  ;;  %v2772_v45 = vpop.f32.mrb[11].mxu0 }
 0x51b   : >> { %v1179_v61 = vpop.f32.mrb[8].mxu1  ;;  %v4582_v45 = vmov %v1081_v53 }
 0x51c   : >> { %v1278_v4 = vadd.f32 %v1179_v61, %v1085_v49   ;;  %v2777_v44 = vpop.f32.mrb[9].mxu1  ;;  %v4586_v49 = vmov %v3983_v56  ;;  %v4128_v61 = vmov (%p4025_p0), 0.0  }
 0x51d   : >> { %v1182_v5 = vpop.f32.mrb[10].mxu1  ;;  %v4581_v44 = vmov %v1082_v57 }
 0x51e   : >> { %v2778_v6 = vpop.f32.mrb[11].mxu1  ;;  %v4578_v41 = vmov %v1278_v4  ;;  %v1286_v34 = vmul.f32 (%p4025_p0), %v3220_v31, %v1278_v4  ;;  %v4130_v4 = vmov (%p4025_p0), 0.0   ;;  %v4132_v44 = vmov (%p4025_p0), 0.0  }
 0x51f   : >> { %v1225_v43 = vpop.f32.mrb[12].mxu0  ;;  %v4134_v5 = vmov (%p4025_p0), 0.0   ;;  %v4136_v6 = vmov (%p4025_p0), 0.0  }
 0x520   : >> { %v1279_v7 = vadd.f32 %v1225_v43, %v1086_v10   ;;  %v2783_v48 = vpop.f32.mrb[13].mxu0  ;;  %v4580_v43 = vmov %v1083_v62  ;;  %810 = sbr.rel (!%p4025_p0) target bundleno = 705 (0x2c1), region = 160  ;;  %1290 = vrot.lane.b32.xlu0 (%p4025_p0), %v1286_v34, %s3580_s1  ;;  %v4138_v10 = vmov (%p4025_p0), 0.0  }
 0x521   : >> { %v1228_v47 = vpop.f32.mrb[14].mxu0  ;;  %v4585_v48 = vmov %v3989_v63  ;;  %v3215_v63 = vld [vmem:[%s4519_s8] sm:$0xff] (%p4025_p0)   ;;  %v4140_v43 = vmov (%p4025_p0), 0.0  }
 0x522   : >> { %v2784_v9 = vpop.f32.mrb[15].mxu0  ;;  %v4577_v40 = vmov %v1279_v7  ;;  %v4584_v47 = vmov %v3995_v3  ;;  %2792 = vmatpush3.bf16.msra.mxu0 (%p4025_p0), %v3215_v63  ;;  %v1287_v36 = vmul.f32 (%p4025_p0), %v3222_v33, %v1279_v7  ;;  %v4142_v7 = vmov (%p4025_p0), 0.0  }
 0x523   : >> { %v1271_v42 = vpop.f32.mrb[12].mxu1  ;;  %2793 = vmatprep.subr.bf16.mxu0 (%p4025_p0), %v3573_v8  ;;  %v1285_v40 = vmul.f32 (%p4025_p0), %v3226_v38, %v4574_v1  ;;  %v4144_v48 = vmov (%p4025_p0), -inf   ;;  %v4146_v47 = vmov (%p4025_p0), -inf   ;;  %v4148_v9 = vmov (%p4025_p0), -inf  }
 0x524   : >> { %v1280_v12 = vadd.f32 %v1271_v42, %v1087_v11   ;;  %v2789_v13 = vpop.f32.mrb[13].mxu1  ;;  %v4579_v42 = vmov %v4574_v1  ;;  %1294 = vrot.lane.b32.xlu0 (%p4025_p0), %v1287_v36, %s3582_s22  ;;  %v4150_v11 = vmov (%p4025_p0), -inf  }
 0x525   : >> { %v1274_v17 = vpop.f32.mrb[14].mxu1 }
 0x526   : >> { %v2790_v18 = vpop.f32.mrb[15].mxu1  ;;  %v4576_v39 = vmov %v1280_v12  ;;  %2794 = vmatpush3.bf16.msra.mxu0 (%p4025_p0), %v3216_v28  ;;  %v1288_v37 = vmul.f32 (%p4025_p0), %v3224_v35, %v1280_v12 }
 0x528   : > { %1298 = vrot.lane.b32.xlu1 %v1288_v37, %s3581_s20 }
 0x592   : > { %v1291_v39 = vpop.permute.xlu0 %1290 }
 0x593   : > { %v1302_v32 = vsel %vm839_vm3, %v1285_v40, %v1291_v39 }
 0x596   : > { %v1295_v56 = vpop.permute.xlu0 %1294 }
 0x597   : > { %v1304_v3 = vsel %vm1303_vm5, %v1302_v32, %v1295_v56 }
 0x59a   : > { %v1299_v41 = vpop.permute.xlu1 %1298 }
 0x59b   : > { %v1306_v19 = vsel %vm1305_vm6, %v1304_v3, %v1299_v41 }
 0x59c   : > { %v1307_v20 = vpack.c.bf16 %v1306_v19, %v1306_v19 }
 0x59e   : > { %2796 = vmatmul.mubr.msk.bf16.vlgmr.msra.gmra.mrb[0].mxu0 %vm699_vm0, %v1307_v20 }
 0x671   : > { %v1368_v25 = vpop.f32.mrb[0].mxu0 }
 0x672   : > { %v1369_v26 = vadd.f32 %v2627_v23, %v1368_v25  ;;  %v2797_v27 = vpop.f32.mrb[1].mxu0 }
 0x673   : > { %v1371_v29 = vpop.f32.mrb[2].mxu0 }
 0x674   : > { %v1378_v30 = vmul.f32 %v1377_v24, %v1369_v26  ;;  %v2798_v53 = vpop.f32.mrb[3].mxu0 }
 0x676   : > { %v4098_v52 = vadd.f32 %v1378_v30, %v3782_v0 }
 0x678   : > { %v1380_v54 = vpack.c.bf16 %v4098_v52, %v4098_v52 }
 0x67a   : > { %2804 = vmatmul.mubr.msk.bf16.vlgmr.msra.gmra.mrb[0].mxu1 %vm699_vm0, %v1380_v54 }
 0x74d   : > { %v1441_v57 = vpop.f32.mrb[0].mxu1 }
 0x74e   : > { %v4106_v58 = vadd.f32 %v2631_v55, %v1441_v57  ;;  %v2805_v59 = vpop.f32.mrb[1].mxu1 }
 0x74f   : > { %v1444_v62 = vpop.f32.mrb[2].mxu1 }
 0x750   : > { %v1457_v50 = vpack.c.bf16 %v4106_v58, %v4106_v58  ;;  %1451 = vrot.lane.b32.xlu0 %v4106_v58, %s3577_s15  ;;  %1448 = vrot.lane.b32.xlu1 %v4106_v58, %s3576_s26  ;;  %v2806_v0 = vpop.f32.mrb[3].mxu1 }
 0x754   : > { %1454 = vrot.lane.b32.xlu1 %v4106_v58, %s3575_s21  ;;  %s4152_s21 = smov 0  }
 0x7c2   : > { %v4116_v60 = vpop.permute.xlu0 %1451  ;;  %v4118_v1 = vpop.permute.xlu1 %1448 }
 0x7c3   : > { %v1459_v46 = vpack.c.bf16 %v4116_v60, %v4116_v60  ;;  %v1458_v2 = vpack.c.bf16 %v4118_v1, %v4118_v1 }
 0x7c6   : > { %v4124_v45 = vpop.permute.xlu1 %1454 }
 0x7c7   : > { %v1460_v49 = vpack.c.bf16 %v4124_v45, %v4124_v45 }
 0x7c8 LB: >> { %v3583_v42 = vmov 0.0   ;;  %s2635_s26 = sshll.u32 %s3571_s21, 3  ;;  %vm3584_vm7 = vmmov 0   ;;  %s1466_s21 = sadd.s32 1, %s3571_s21   ;;  %s3571_s21 = sphi %s4152_s21, %s1466_s21   ;;  %v3567_v11 = vphi %v4150_v11, %v4602_v11   ;;  %v3563_v9 = vphi %v4148_v9, %v4601_v9   ;;  %v3559_v47 = vphi %v4146_v47, %v4600_v47   ;;  %v3555_v48 = vphi %v4144_v48, %v4599_v48   ;;  %v3551_v7 = vphi %v4142_v7, %v4598_v7   ;;  %v3547_v43 = vphi %v4140_v43, %v4597_v43   ;;  %v3543_v10 = vphi %v4138_v10, %v4596_v10   ;;  %v3539_v6 = vphi %v4136_v6, %v4595_v6   ;;  %v3535_v5 = vphi %v4134_v5, %v4594_v5   ;;  %v3531_v44 = vphi %v4132_v44, %v4593_v44   ;;  %v3527_v4 = vphi %v4130_v4, %v4592_v4   ;;  %v3523_v61 = vphi %v4128_v61, %v4591_v61  }
 0x7c9   : >> { %2807 = vmatprep.subr.bf16.mxu0 %v3583_v42  ;;  %2813 = vmatprep.subr.bf16.mxu1 %v3583_v42  ;;  %s4200_s15 = sshra.s32 %s2635_s26, 3  ;;  %p4314_p1 = scmp.ge.s32.totalorder %s1466_s21, 2  }
 0x7ca   : >> { %2809 = vmatprep.mubr.msk.bf16.mxu0 %vm3584_vm7, %v3583_v42  ;;  %2815 = vmatprep.mubr.msk.bf16.mxu1 %vm3584_vm7, %v3583_v42  ;;  %s2636_s24 = sshll.u32 %s4200_s15, 2  ;;  %v3244_v58 = vld [vmem:[%s4523_s12 + $0x8] sm:$0xff] (%p4314_p1)   ;;  %s4606_s15 = sld [smem:[#allocation23_spill]] (%p4314_p1)  ;;  %vm2225_vm8 = vcmask (%p4314_p1), 523264  }
 0x7cb   : >> { %s1483_s30 = scalar_lea.vmem %s690_s19, %s2636_s24  ;;  %s4253_s16 = scalar_lea.vmem %s695_s18, %s2636_s24 }
 0x7cc   : >> { %v1484_v12 = vld [vmem:[%s1483_s30] sm:$0xf]  ;;  %v1485_v13 = vld [vmem:[%s1483_s30 + $0x8] sm:$0xf]  ;;  %v1486_v63 = vld [vmem:[%s1483_s30 + $0x10] sm:$0xf] }
 0x7cd   : >> { %v1498_v17 = vsel %vm839_vm3, %v1484_v12, 0  ;;  %v1544_v18 = vsel %vm839_vm3, %v1485_v13, 0  ;;  %v1487_v28 = vld [vmem:[%s1483_s30 + $0x18] sm:$0xf]  ;;  %v1590_v31 = vsel %vm839_vm3, %v1486_v63, 0  ;;  %s4604_s24 = sld [smem:[#allocation21_spill]] (%p4314_p1) }
 0x7ce   : >> { %2808 = vmatpush3.bf16.xpose.msra.mxu0 %v1498_v17  ;;  %2814 = vmatpush3.bf16.xpose.msra.mxu1 %v1544_v18  ;;  %v1636_v33 = vsel %vm839_vm3, %v1487_v28, 0  ;;  %v1490_v27 = vld [vmem:[%s4253_s16] sm:$0xf]  ;;  %v1491_v30 = vld [vmem:[%s4253_s16 + $0x8] sm:$0xf]  ;;  %s3585_s30 = smov (%p4314_p1), 64  }
 0x7cf   : >> { %2819 = vmatprep.subr.bf16.mxu0 %v3583_v42  ;;  %2825 = vmatprep.subr.bf16.mxu1 %v3583_v42  ;;  %v1751_v29 = vsel %vm1095_vm4, %v1490_v27, 0  ;;  %v1797_v53 = vsel %vm1095_vm4, %v1491_v30, 0  ;;  %s4607_s26 = sld [smem:[#allocation8_spill]] (%p4314_p1)  ;;  %s4608_s23 = sld [smem:[#allocation7_spill]] (%p4314_p1) }
 0x7d0   : > { %s2367_s2 = sshll.u32 (%p4314_p1), %s663_s27, 4  ;;  %s4611_s25 = sld [smem:[#allocation25_spill]] (%p4314_p1)  ;;  %s4455_s2 = int_to_ptr.vmem [resolvable:$true] %s2367_s2 }
 0x7d1   : > { %s2352_s17 = scalar_lea.sflag (%p4314_p1), [#allocation3], %s661_s14 }
 0x7d5   : >> { %2810 = vmatmul.mubr.msk.bf16.vlgmr.msra.gmra.mrb[0].mxu0 %vm839_vm3, %v1457_v50  ;;  %2816 = vmatmul.mubr.msk.bf16.vlgmr.msra.gmra.mrb[0].mxu1 %vm839_vm3, %v1458_v2  ;;  %s2667_s19 = sshll.u32 (%p4314_p1), %s4607_s26, 1  ;;  %s3269_s26 = scalar_lea.vmem (%p4314_p1), %s4455_s2, 128 }
 0x7d6   : >> { %2820 = vmatpush3.bf16.xpose.msra.mxu0 %v1590_v31  ;;  %2826 = vmatpush3.bf16.xpose.msra.mxu1 %v1636_v33  ;;  %s2363_s21 = sadd.s32 (%p4314_p1), %s4608_s23, %s2667_s19  ;;  %p3270_p2 = scmp.ne.s32.totalorder (%p4314_p1), %s4455_s2, %s3269_s26 }
 0x7d7   : >> { %2821 = vmatprep.mubr.msk.bf16.mxu0 %vm3584_vm7, %v3583_v42  ;;  %2827 = vmatprep.mubr.msk.bf16.mxu1 %vm3584_vm7, %v3583_v42  ;;  %s2668_s29 = sshll.u32 (%p4314_p1), %s2363_s21, 7  ;;  %s3586_s23 = smov (%p4314_p1), [#allocation2]  }
 0x7d8   : >> { %2831 = vmatprep.subr.bf16.mxu0 %v3583_v42  ;;  %2837 = vmatprep.subr.bf16.mxu1 %v3583_v42  ;;  %p3271_p4 = pnand (%p4314_p1), %p3270_p2, %p3733_p3  ;;  %s3273_s19 = sshll.u32 (%p4314_p1), %s3586_s23, 4  ;;  %s3274_s19 = int_to_ptr.vmem [resolvable:$false] %s3273_s19 }
 0x7d9   : > { %s3275_s18 = scalar_lea.vmem (%p4314_p1), %s3274_s19, 256  ;;  %p3276_p6 = scmp.lt.s32.totalorder (%p4314_p1), %s4455_s2, %s3274_s19 }
 0x7da   : > { %p3272_p5 = pneg (%p4314_p1), %p3271_p4  ;;  %p3277_p7 = scmp.lt.s32.totalorder (%p4314_p1), %s3275_s18, %s3269_s26 }
 0x7dc   : > { %p3278_p9 = por (%p4314_p1), %p3277_p7, %p3276_p6 }
 0x7dd   : >> { %2822 = vmatmul.mubr.msk.bf16.vlgmr.msra.gmra.mrb[4].mxu0 %vm839_vm3, %v1459_v46  ;;  %2828 = vmatmul.mubr.msk.bf16.vlgmr.msra.gmra.mrb[4].mxu1 %vm839_vm3, %v1460_v49 }
 0x7de   : >> { %2833 = vmatprep.mubr.msk.bf16.mxu0 %vm3584_vm7, %v3583_v42  ;;  %2839 = vmatprep.mubr.msk.bf16.mxu1 %vm3584_vm7, %v3583_v42  ;;  %p3279_p10 = pnand (%p4314_p1), %p3278_p9, %p3272_p5 }
 0x7df   : >> { %2832 = vmatpush3.bf16.msra.mxu0 %v1751_v29  ;;  %2838 = vmatpush3.bf16.msra.mxu1 %v1797_v53 }
 0x7e0   : >> { %2843 = vmatprep.subr.bf16.mxu0 %v3583_v42  ;;  %2849 = vmatprep.subr.bf16.mxu1 %v3583_v42 }
 0x8a8   : >> { %v1534_v34 = vpop.f32.mrb[0].mxu0  ;;  %v1580_v35 = vpop.f32.mrb[0].mxu1 }
 0x8a9   : >> { %v2811_v36 = vpop.f32.mrb[1].mxu0  ;;  %v1678_v37 = vsel %vm839_vm3, %v1534_v34, -inf  ;;  %v2817_v38 = vpop.f32.mrb[1].mxu1  ;;  %v1681_v56 = vsel %vm839_vm3, %v1580_v35, -inf }
 0x8aa   : >> { %1679 = vmax.xlane.f32.xlu0 %v1678_v37  ;;  %v1537_v39 = vpop.f32.mrb[2].mxu0  ;;  %v1583_v40 = vpop.f32.mrb[2].mxu1  ;;  %v1492_v37 = vld [vmem:[%s4253_s16 + $0x10] sm:$0xf] }
 0x8ab   : >> { %v2812_v41 = vpop.f32.mrb[3].mxu0  ;;  %v2818_v32 = vpop.f32.mrb[3].mxu1 }
 0x8ac   : >> { %v1843_v41 = vsel %vm1095_vm4, %v1492_v37, 0  ;;  %v1493_v32 = vld [vmem:[%s4253_s16 + $0x18] sm:$0xf]  ;;  %s4605_s16 = sld [smem:[#allocation22_spill]] (%p4314_p1) }
 0x8ae   : >> { %1682 = vmax.xlane.f32.xlu0 %v1681_v56 }
 0x8b0   : >> { %v1626_v3 = vpop.f32.mrb[4].mxu0  ;;  %v1672_v19 = vpop.f32.mrb[4].mxu1 }
 0x8b1   : >> { %v2823_v20 = vpop.f32.mrb[5].mxu0  ;;  %v1684_v21 = vsel %vm839_vm3, %v1626_v3, -inf  ;;  %v2829_v51 = vpop.f32.mrb[5].mxu1  ;;  %v1687_v26 = vsel %vm839_vm3, %v1672_v19, -inf }
 0x8b2   : >> { %1685 = vmax.xlane.f32.xlu1 %v1684_v21  ;;  %v1629_v22 = vpop.f32.mrb[6].mxu0  ;;  %v1675_v23 = vpop.f32.mrb[6].mxu1 }
 0x8b3   : >> { %v2824_v24 = vpop.f32.mrb[7].mxu0  ;;  %v2830_v25 = vpop.f32.mrb[7].mxu1 }
 0x8b6   : >> { %1688 = vmax.xlane.f32.xlu1 %v1687_v26 }
 0x937   : >> { %v1680_v54 = vpop.xlane.xlu0 %1679 }
 0x938   : >> { %v4262_v55 = vmax.f32 %v3567_v11, %v1680_v54  }
 0x93a   : >> { %v1694_v57 = vsub.f32 %v3567_v11, %v4262_v55  ;;  %v1706_v59 = vsub.f32 %v1534_v34, %v4262_v55 }
 0x93b   : >> { %v1683_v62 = vpop.xlane.xlu0 %1682 }
 0x93c   : >> { %v1710_v0 = vmul.f32 1.442695, %v1706_v59  ;;  %v4268_v12 = vmax.f32 %v3563_v9, %v1683_v62   ;;  %v1698_v25 = vmul.f32 1.442695, %v1694_v57 }
 0x93e   : >> { %v1695_v13 = vsub.f32 %v3563_v9, %v4268_v12  ;;  %v1707_v17 = vsub.f32 %v1580_v35, %v4268_v12  ;;  %3227 = vpow2.f32 %v1710_v0 }
 0x93f   : >> { %v1686_v18 = vpop.xlane.xlu1 %1685 }
 0x940   : >> { %v1712_v63 = vmul.f32 1.442695, %v1707_v17  ;;  %v4274_v28 = vmax.f32 %v3559_v47, %v1686_v18   ;;  %v1700_v26 = vmul.f32 1.442695, %v1695_v13 }
 0x942   : >> { %v1696_v11 = vsub.f32 %v3559_v47, %v4274_v28  ;;  %v1708_v31 = vsub.f32 %v1626_v3, %v4274_v28  ;;  %3229 = vpow2.f32 %v1712_v63 }
 0x943   : >> { %v1689_v33 = vpop.xlane.xlu1 %1688 }
 0x944   : >> { %v1714_v34 = vmul.f32 1.442695, %v1708_v31  ;;  %v4280_v36 = vmax.f32 %v3555_v48, %v1689_v33   ;;  %v1702_v27 = vmul.f32 1.442695, %v1696_v11 }
 0x946   : >> { %v1697_v9 = vsub.f32 %v3555_v48, %v4280_v36  ;;  %v1709_v35 = vsub.f32 %v1672_v19, %v4280_v36  ;;  %3231 = vpow2.f32 %v1714_v34  ;;  %v1889_v19 = vsel %vm1095_vm4, %v1493_v32, 0 }
 0x948   : >> { %v1716_v38 = vmul.f32 1.442695, %v1709_v35  ;;  %v3228_v39 = vpop.eup %3227 }
 0x949   : >> { %v1722_v47 = vsel %vm839_vm3, %v3228_v39, 0.0  ;;  %v1742_v40 = vpack.c.bf16 %v3228_v39, %v3228_v39 }
 0x94a   : >> { %3233 = vpow2.f32 %v1716_v38  ;;  %1723 = vadd.xlane.f32.xlu0 %v1722_v47 }
 0x94b   : >> { %2834 = vmatmul.mubr.msk.bf16.vlgmr.msra.gmra.mrb[8].mxu0 %vm839_vm3, %v1742_v40  ;;  %3235 = vpow2.f32 %v1698_v25 }
 0x94c   : >> { %v3230_v56 = vpop.eup %3229  ;;  %2844 = vmatpush3.bf16.msra.mxu0 %v1843_v41  ;;  %2845 = vmatprep.mubr.msk.bf16.mxu0 %vm3584_vm7, %v3583_v42  ;;  %3237 = vpow2.f32 %v1700_v26 }
 0x94d   : >> { %v1725_v48 = vsel %vm839_vm3, %v3230_v56, 0.0  ;;  %v1743_v3 = vpack.c.bf16 %v3230_v56, %v3230_v56  ;;  %3239 = vpow2.f32 %v1702_v27  ;;  %2855 = vmatprep.subr.bf16.mxu0 (%p4314_p1), %v3573_v8 }
 0x94e   : >> { %1726 = vadd.xlane.f32.xlu1 %v1725_v48 }
 0x94f   : >> { %2840 = vmatmul.mubr.msk.bf16.vlgmr.msra.gmra.mrb[8].mxu1 %vm839_vm3, %v1743_v3 }
 0x950   : >> { %v3232_v20 = vpop.eup %3231  ;;  %2850 = vmatpush3.bf16.msra.mxu1 %v1889_v19  ;;  %2851 = vmatprep.mubr.msk.bf16.mxu1 %vm3584_vm7, %v3583_v42  ;;  %v1704_v42 = vmul.f32 1.442695, %v1697_v9 }
 0x951   : >> { %v1728_v21 = vsel %vm839_vm3, %v3232_v20, 0.0  ;;  %v1744_v51 = vpack.c.bf16 %v3232_v20, %v3232_v20  ;;  %2863 = vmatprep.subr.bf16.mxu1 (%p4314_p1), %v3573_v8 }
 0x952   : >> { %1729 = vadd.xlane.f32.xlu0 %v1728_v21  ;;  %3241 = vpow2.f32 %v1704_v42 }
 0x953   : >> { %2846 = vmatmul.mubr.msk.bf16.vlgmr.msra.gmra.mrb[12].mxu0 %vm839_vm3, %v1744_v51 }
 0x954   : >> { %v3234_v22 = vpop.eup %3233  ;;  %2859 = vmatprep.mubr.msk.bf16.mxu0 (%p4314_p1), %vm3574_vm1, %v3573_v8 }
 0x955   : >> { %v1731_v23 = vsel %vm839_vm3, %v3234_v22, 0.0  ;;  %v1745_v24 = vpack.c.bf16 %v3234_v22, %v3234_v22  ;;  %v3236_v29 = vpop.eup %3235 }
 0x956   : >> { %1732 = vadd.xlane.f32.xlu1 %v1731_v23  ;;  %v1718_v30 = vmul.f32 %v3551_v7, %v3236_v29  ;;  %v3238_v53 = vpop.eup %3237  ;;  %v1738_v9 = vmul.f32 %v3535_v5, %v3236_v29 }
 0x957   : >> { %2852 = vmatmul.mubr.msk.bf16.vlgmr.msra.gmra.mrb[12].mxu1 %vm839_vm3, %v1745_v24  ;;  %v1719_v62 = vmul.f32 %v3547_v43, %v3238_v53  ;;  %v3240_v0 = vpop.eup %3239  ;;  %v1739_v39 = vmul.f32 %v3531_v44, %v3238_v53 }
 0x958   : >> { %v1720_v57 = vmul.f32 %v3543_v10, %v3240_v0  ;;  %v1740_v56 = vmul.f32 %v3527_v4, %v3240_v0  ;;  %2867 = vmatprep.mubr.msk.bf16.mxu1 (%p4314_p1), %vm3574_vm1, %v3573_v8  ;;  %v3245_v0 = vld [vmem:[%s4604_s24] sm:$0xff] (%p4314_p1)  }
 0x959   : > { %2864 = vmatpush3.bf16.msra.mxu1 (%p4314_p1), %v3245_v0 }
 0x95a   : > { %2865 = vmatprep.subr.bf16.mxu1 (%p4314_p1), %v3573_v8 }
 0x95c   : >> { %v3242_v13 = vpop.eup %3241 }
 0x95d   : >> { %v1721_v11 = vmul.f32 %v3539_v6, %v3242_v13  ;;  %v1741_v21 = vmul.f32 %v3523_v61, %v3242_v13 }
 0x9d7   : >> { %v1724_v54 = vpop.xlane.xlu0 %1723 }
 0x9d8   : >> { %v4302_v7 = vadd.f32 %v1724_v54, %v1718_v30  }
 0x9da   : >> { %v4588_v59 = vmov %v4302_v7 }
 0x9db   : >> { %v1727_v17 = vpop.xlane.xlu1 %1726 }
 0x9dc   : >> { %v1735_v18 = vadd.f32 %v1727_v17, %v1719_v62   ;;  %v3246_v17 = vld [vmem:[%s4604_s24 + $0x8] sm:$0xff] (%p4314_p1)  }
 0x9dd   : > { %2866 = vmatpush3.bf16.msra.mxu1 (%p4314_p1), %v3246_v17 }
 0x9de   : > { %3255 = vrcp.f32 (%p4314_p1), %v1735_v18  ;;  %2879 = vmatprep.subr.bf16.mxu1 (%p4314_p1), %v3573_v8 }
 0x9df   : >> { %v1730_v63 = vpop.xlane.xlu0 %1729 }
 0x9e0   : >> { %v1736_v31 = vadd.f32 %v1730_v63, %v1720_v57  }
 0x9e2   : > { %3257 = vrcp.f32 (%p4314_p1), %v1736_v31 }
 0x9e3   : >> { %v1733_v33 = vpop.xlane.xlu1 %1732 }
 0x9e4   : >> { %v1737_v34 = vadd.f32 %v1733_v33, %v1721_v11   ;;  %v4602_v11 = vmov %v4262_v55 }
 0x9e6   : > { %3259 = vrcp.f32 (%p4314_p1), %v1737_v34 }
 0x9e7   : > { %3261 = vrcp.f32 (%p4314_p1), %v4588_v59 }
 0x9e8   : > { %v3256_v50 = vpop.eup (%p4314_p1), %3255 }
 0x9ec   : > { %v3258_v60 = vpop.eup (%p4314_p1), %3257 }
 0x9f0   : > { %v3260_v46 = vpop.eup (%p4314_p1), %3259 }
 0x9f1   : > { %v3262_v49 = vpop.eup (%p4314_p1), %3261 }
 0xa1e   : >> { %v1787_v35 = vpop.f32.mrb[8].mxu0 }
 0xa1f   : >> { %v4308_v5 = vadd.f32 %v1787_v35, %v1738_v9   ;;  %v2835_v7 = vpop.f32.mrb[9].mxu0  ;;  %v4601_v9 = vmov %v4268_v12 }
 0xa20   : >> { %v1790_v38 = vpop.f32.mrb[10].mxu0  ;;  %v4598_v7 = vmov %v4588_v59 }
 0xa21   : >> { %v4589_v37 = vmov %v4308_v5  ;;  %v2836_v43 = vpop.f32.mrb[11].mxu0  ;;  %v2046_v7 = vsub.s32 (%p4314_p1), 3, %v3807_v14 }
 0xa22   : >> { %v1833_v47 = vpop.f32.mrb[8].mxu1  ;;  %v4597_v43 = vmov %v1735_v18 }
 0xa23   : >> { %v1932_v40 = vadd.f32 %v1833_v47, %v1739_v39   ;;  %v2841_v10 = vpop.f32.mrb[9].mxu1  ;;  %v4600_v47 = vmov %v4274_v28 }
 0xa24   : >> { %v1836_v41 = vpop.f32.mrb[10].mxu1  ;;  %v4596_v10 = vmov %v1736_v31  ;;  %v2650_v31 = vld [vmem:[%s4605_s16] ss:$0 sm:$0xff] (%p4314_p1)  ;;  %v2047_v47 = vrot.slane (%p4314_p1), %v3809_v15, %v2046_v7  ;;  %s4453_s16 = scalar_lea.hbm (%p4314_p1), %s4611_s25, %s2668_s29 }
 0xa25   : >> { %v2842_v32 = vpop.f32.mrb[11].mxu1  ;;  %v4593_v44 = vmov %v1932_v40  ;;  %v1940_v1 = vmul.f32 (%p4314_p1), %v3256_v50, %v1932_v40 }
 0xa26   : >> { %v1879_v6 = vpop.f32.mrb[12].mxu0  ;;  %v3248_v32 = vld [vmem:[%s4606_s15] sm:$0xff] (%p4314_p1)  }
 0xa27   : >> { %v1933_v3 = vadd.f32 %v1879_v6, %v1740_v56   ;;  %v2847_v48 = vpop.f32.mrb[13].mxu0  ;;  %v4595_v6 = vmov %v1737_v34  ;;  %1465 = sbr.rel (!%p4314_p1) target bundleno = 1992 (0x7c8), region = 171  ;;  %1944 = vrot.lane.b32.xlu0 (%p4314_p1), %v1940_v1, %s3580_s1  ;;  %v3249_v56 = vld [vmem:[%s4606_s15 + $0x28] sm:$0xff] (%p4314_p1)  }
 0xa28   : >> { %v1882_v19 = vpop.f32.mrb[14].mxu0  ;;  %v4599_v48 = vmov %v4280_v36  ;;  %v3243_v36 = vld [vmem:[%s4523_s12] sm:$0xff] (%p4314_p1)   ;;  %v3250_v6 = vld [vmem:[%s4606_s15 + $0x8] sm:$0xff] (%p4314_p1)  }
 0xa29   : >> { %v2848_v20 = vpop.f32.mrb[15].mxu0  ;;  %v4592_v4 = vmov %v1933_v3  ;;  %2856 = vmatpush3.bf16.msra.mxu0 (%p4314_p1), %v3243_v36  ;;  %v1941_v2 = vmul.f32 (%p4314_p1), %v3258_v60, %v1933_v3  ;;  %v3251_v3 = vld [vmem:[%s4606_s15 + $0x30] sm:$0xff] (%p4314_p1)   ;;  %v3253_v19 = vld [vmem:[%s4606_s15 + $0x38] sm:$0xff] (%p4314_p1)  }
 0xa2a   : >> { %v1925_v5 = vpop.f32.mrb[12].mxu1  ;;  %2857 = vmatprep.subr.bf16.mxu0 (%p4314_p1), %v3573_v8  ;;  %v1939_v4 = vmul.f32 (%p4314_p1), %v3262_v49, %v4589_v37  ;;  %v3252_v48 = vld [vmem:[%s4606_s15 + $0x10] sm:$0xff] (%p4314_p1)   ;;  %v3254_v20 = vld [vmem:[%s4606_s15 + $0x18] sm:$0xff] (%p4314_p1)  }
 0xa2b   : >> { %v1934_v51 = vadd.f32 %v1925_v5, %v1741_v21   ;;  %v2853_v22 = vpop.f32.mrb[13].mxu1  ;;  %v4594_v5 = vmov %v4589_v37  ;;  %1948 = vrot.lane.b32.xlu0 (%p4314_p1), %v1941_v2, %s3582_s22  ;;  %v2041_v37 = vsub.s32 (%p4314_p1), 4, %v3807_v14 }
 0xa2c   : >> { %v1928_v23 = vpop.f32.mrb[14].mxu1 }
 0xa2d   : >> { %v2854_v24 = vpop.f32.mrb[15].mxu1  ;;  %v4591_v61 = vmov %v1934_v51  ;;  %2858 = vmatpush3.bf16.msra.mxu0 (%p4314_p1), %v3244_v58  ;;  %v1942_v45 = vmul.f32 (%p4314_p1), %v3260_v46, %v1934_v51  ;;  %v2042_v38 = vrot.slane (%p4314_p1), %v3812_v16, %v2041_v37  ;;  %v3247_v16 = vld [vmem:[%s4606_s15 + $0x20] sm:$0xff] (%p4314_p1)  }
 0xa2e   : > { %2871 = vmatprep.subr.bf16.mxu0 %v3573_v8 }
 0xa2f   : > { %1952 = vrot.lane.b32.xlu1 %v1942_v45, %s3581_s20  ;;  %s4603_s20 = sld [smem:[#allocation20_spill]] }
 0xa35   : > { %v2646_v27 = vld [vmem:[%s4603_s20] ss:$0 sm:$0xff]  ;;  %s4609_s20 = sld [smem:[#allocation24_spill]] }
 0xa99   : > { %v1945_v61 = vpop.permute.xlu0 %1944 }
 0xa9a   : > { %v1955_v55 = vsel %vm839_vm3, %v1939_v4, %v1945_v61 }
 0xa9d   : > { %v1949_v12 = vpop.permute.xlu0 %1948 }
 0xa9e   : > { %v1956_v28 = vsel %vm1303_vm5, %v1955_v55, %v1949_v12 }
 0xaa1   : > { %v1953_v44 = vpop.permute.xlu1 %1952 }
 0xaa2   : > { %v1957_v25 = vsel %vm1305_vm6, %v1956_v28, %v1953_v44 }
 0xaa3   : > { %v1958_v26 = vpack.c.bf16 %v1957_v25, %v1957_v25 }
 0xaa5   : > { %2860 = vmatmul.mubr.msk.bf16.vlgmr.msra.gmra.mrb[0].mxu0 %vm699_vm0, %v1958_v26 }
 0xaa6   : > { %2875 = vmatprep.mubr.msk.bf16.mxu0 %vm3574_vm1, %v3573_v8 }
 0xb78   : > { %v2019_v42 = vpop.f32.mrb[0].mxu0 }
 0xb79   : > { %v2020_v29 = vadd.f32 %v2646_v27, %v2019_v42  ;;  %v2861_v30 = vpop.f32.mrb[1].mxu0 }
 0xb7a   : > { %v2022_v53 = vpop.f32.mrb[2].mxu0 }
 0xb7b   : > { %v4381_v54 = vadd.f32 %v2020_v29, %v4098_v52  ;;  %v2862_v59 = vpop.f32.mrb[3].mxu0 }
 0xb7d   : > { %v2026_v62 = vsel %vm699_vm0, %v4381_v54, 0.0 }
 0xb7e   : > { %2027 = vadd.xlane.f32.xlu1 %v2026_v62 }
 0xb8f   : > { %2136 = vrot.lane.b32.xlu1 %v3246_v17, %s3585_s30 }
 0xb93   : > { %2140 = vrot.lane.b32.xlu1 %v2650_v31, %s3585_s30 }
 0xc0b   : > { %v2028_v52 = vpop.xlane.xlu1 %2027 }
 0xc0c   : > { %v2029_v18 = vmul.f32 0.03125, %v2028_v52 }
 0xc0e   : > { %v2030_v57 = vsub.f32 %v4381_v54, %v2029_v18  ;;  %v2665_v18 = vld [vmem:[%s4609_s20] ss:$0 sm:$0xff] }
 0xc0f   : > { %v2137_v35 = vpop.permute.xlu1 %2136 }
 0xc10   : > { %v2031_v13 = vmul.f32 %v2030_v57, %v2030_v57 }
 0xc12   : > { %v2032_v63 = vsel %vm699_vm0, %v2031_v13, 0.0 }
 0xc13   : > { %2033 = vadd.xlane.f32.xlu0 %v2032_v63  ;;  %v2141_v21 = vpop.permute.xlu1 %2140 }
 0xc29   : > { %2134 = vrot.lane.b32.xlu0 %v3245_v0, %s3585_s30  ;;  %v2346_v0 = vsub.s32 5, %v3807_v14 }
 0xc2b   : > { %v2347_v63 = vrot.slane %v3809_v15, %v2346_v0 }
 0xca0   : > { %v2034_v11 = vpop.xlane.xlu0 %2033 }
 0xca1   : > { %v2035_v33 = vmul.f32 0.03125, %v2034_v11 }
 0xca3   : > { %v2036_v34 = vadd.f32 1e-06, %v2035_v33 }
 0xca4   : > { %v2135_v9 = vpop.permute.xlu0 %2134 }
 0xca5   : > { %3263 = vrsqrt.f32 %v2036_v34  ;;  %2872 = vmatpush3.bf16.msra.mxu0 %v2135_v9 }
 0xca6   : > { %2873 = vmatprep.subr.bf16.mxu0 %v3573_v8 }
 0xca9   : > { %2874 = vmatpush3.bf16.msra.mxu0 %v2137_v35 }
 0xcaa   : > { %2891 = vmatprep.subr.bf16.mxu0 %v3573_v8 }
 0xcaf   : > { %v3264_v43 = vpop.eup %3263 }
 0xcb0   : > { %v2038_v39 = vmul.f32 %v3264_v43, %v2030_v57 }
 0xcb2   : > { %v2043_v40 = vmul.f32 %v2042_v38, %v2038_v39 }
 0xcb4   : > { %v2048_v10 = vadd.f32 %v2047_v47, %v2043_v40 }
 0xcb6   : > { %v2049_v41 = vpack.c.bf16 %v2048_v10, %v2048_v10 }
 0xcb8   : > { %2868 = vmatmul.mubr.msk.bf16.vlgmr.msra.gmra.mrb[0].mxu1 %vm699_vm0, %v2049_v41  ;;  %2876 = vmatmul.mubr.msk.bf16.vlgmr.msra.gmra.mrb[4].mxu0 %vm699_vm0, %v2049_v41 }
 0xcb9   : > { %2887 = vmatprep.mubr.msk.bf16.mxu1 %vm3574_vm1, %v3573_v8  ;;  %2899 = vmatprep.mubr.msk.bf16.mxu0 %vm3574_vm1, %v3573_v8 }
 0xcba   : > { %2880 = vmatpush3.bf16.msra.mxu1 %v3247_v16  ;;  %2892 = vmatpush3.bf16.msra.mxu0 %v3248_v32 }
 0xcbb   : > { %2881 = vmatprep.subr.bf16.mxu1 %v3573_v8  ;;  %2893 = vmatprep.subr.bf16.mxu0 %v3573_v8 }
 0xcbe   : > { %2882 = vmatpush3.bf16.msra.mxu1 %v3249_v56  ;;  %2894 = vmatpush3.bf16.msra.mxu0 %v3250_v6 }
 0xcbf   : > { %2883 = vmatprep.subr.bf16.mxu1 %v3573_v8  ;;  %2895 = vmatprep.subr.bf16.mxu0 %v3573_v8 }
 0xcc2   : > { %2884 = vmatpush3.bf16.msra.mxu1 %v3251_v3  ;;  %2896 = vmatpush3.bf16.msra.mxu0 %v3252_v48 }
 0xcc3   : > { %2885 = vmatprep.subr.bf16.mxu1 %v3573_v8  ;;  %2897 = vmatprep.subr.bf16.mxu0 %v3573_v8 }
 0xcc6   : > { %2886 = vmatpush3.bf16.msra.mxu1 %v3253_v19  ;;  %2898 = vmatpush3.bf16.msra.mxu0 %v3254_v20 }
 0xd8b   : > { %v2110_v5 = vpop.f32.mrb[0].mxu1  ;;  %v2177_v51 = vpop.f32.mrb[4].mxu0 }
 0xd8c   : > { %v2111_v22 = vadd.f32 %v2650_v31, %v2110_v5  ;;  %v2178_v23 = vadd.f32 %v2177_v51, %v2141_v21  ;;  %v2869_v24 = vpop.f32.mrb[1].mxu1  ;;  %v2877_v36 = vpop.f32.mrb[5].mxu0 }
 0xd8d   : > { %v2113_v58 = vpop.f32.mrb[2].mxu1  ;;  %v2180_v50 = vpop.f32.mrb[6].mxu0 }
 0xd8e   : > { %v2117_v60 = vmul.f32 0.044715, %v2111_v22  ;;  %v2184_v1 = vmul.f32 0.044715, %v2178_v23  ;;  %v2870_v46 = vpop.f32.mrb[3].mxu1  ;;  %v2878_v2 = vpop.f32.mrb[7].mxu0 }
 0xd8f   : > { %v2116_v26 = vmul.f32 0.5, %v2111_v22  ;;  %v2183_v42 = vmul.f32 0.5, %v2178_v23 }
 0xd90   : > { %v2118_v45 = vmul.f32 %v2117_v60, %v2111_v22  ;;  %v2185_v49 = vmul.f32 %v2184_v1, %v2178_v23 }
 0xd92   : > { %v2119_v61 = vmul.f32 %v2118_v45, %v2111_v22  ;;  %v2186_v4 = vmul.f32 %v2185_v49, %v2178_v23 }
 0xd94   : > { %v2120_v8 = vadd.f32 %v2119_v61, %v2111_v22  ;;  %v2187_v44 = vadd.f32 %v2186_v4, %v2178_v23 }
 0xd96   : > { %v2121_v55 = vmul.f32 0.7978846, %v2120_v8  ;;  %v2188_v12 = vmul.f32 0.7978846, %v2187_v44 }
 0xd98   : > { %3265 = vtanh.f32 %v2121_v55 }
 0xd99   : > { %3267 = vtanh.f32 %v2188_v12 }
 0xda2   : > { %v3266_v28 = vpop.eup %3265 }
 0xda3   : > { %v3268_v25 = vpop.eup %3267  ;;  %v2123_v27 = vadd.f32 1.0, %v3266_v28 }
 0xda4   : > { %v2190_v29 = vadd.f32 1.0, %v3268_v25 }
 0xda5   : > { %v2124_v30 = vmul.f32 %v2123_v27, %v2116_v26 }
 0xda6   : > { %v2191_v53 = vmul.f32 %v2190_v29, %v2183_v42 }
 0xda7   : > { %v2125_v59 = vpack.c.bf16 %v2124_v30, %v2124_v30 }
 0xda8   : > { %v2192_v62 = vpack.c.bf16 %v2191_v53, %v2191_v53 }
 0xda9   : > { %2900 = vmatmul.mubr.msk.bf16.vlgmr.msra.gmra.mrb[8].mxu0 %vm2225_vm8, %v2125_v59 }
 0xdaa   : > { %2888 = vmatmul.mubr.msk.bf16.vlgmr.msra.gmra.mrb[4].mxu1 %vm2225_vm8, %v2192_v62 }
 0xe7c   : > { %v2330_v17 = vpop.f32.mrb[8].mxu0 }
 0xe7d   : > { %v2263_v52 = vpop.f32.mrb[4].mxu1  ;;  %v2901_v57 = vpop.f32.mrb[9].mxu0 }
 0xe7e   : > { %v2331_v13 = vadd.f32 %v2330_v17, %v2263_v52  ;;  %v2889_v31 = vpop.f32.mrb[5].mxu1  ;;  %v2333_v11 = vpop.f32.mrb[10].mxu0 }
 0xe7f   : > { %v2266_v33 = vpop.f32.mrb[6].mxu1  ;;  %v2902_v14 = vpop.f32.mrb[11].mxu0 }
 0xe80   : > { %v2343_v34 = vadd.f32 %v2665_v18, %v2331_v13  ;;  %v2890_v9 = vpop.f32.mrb[7].mxu1 }
 0xe82   : > { %v2348_v35 = vmul.f32 %v2347_v63, %v2343_v34 }
 0xe84   : > { %v2349_v37 = vadd.f32 %v2348_v35, %v4381_v54 }
 0xe86   : > { %2350 = vst.msk [vmem:[%s663_s27] sm:$0xff] %vm699_vm0, %v2349_v37 }
 0xe87   : > { %3282 = shalt.err (!%p3279_p10)
}
 0xe88   : > { %s3283_s14 = scalar_lea.hbm %s4453_s16, 128  ;;  %s3287_s1 = scalar_lea.hbm %s4611_s25, 512 }
 0xe89   : > { %p3284_p11 = scmp.ne.s32.totalorder %s4453_s16, %s3283_s14  ;;  %p3288_p0 = scmp.lt.u32.totalorder %s4453_s16, %s4611_s25 }
 0xe8a   : > { %p3289_p1 = scmp.lt.u32.totalorder %s3287_s1, %s3283_s14  ;;  %p3291_p4 = scmp.lt.u32.totalorder %s3283_s14, %s4453_s16 }
 0xe8b   : > { %p3285_p12 = pnand %p3284_p11, %p3733_p3 }
 0xe8c   : > { %p3290_p2 = por %p3289_p1, %p3288_p0 }
 0xe8d   : > { %p3286_p13 = pneg %p3285_p12 }
 0xe8e   : > { %p3292_p5 = por %p3291_p4, %p3290_p2 }
 0xe90   : > { %p3293_p6 = pnand %p3292_p5, %p3286_p13 }
 0xe92   : > { %3296 = shalt.err (!%p3293_p6)
}
 0xe93   : > { %2903 = dma.vmem_to_hbm [thread:$0]  (%p3733_p3), %s4455_s2, 128, %s4453_s16, %s2352_s17  }
 0xe94 PF: > { %s4612_s29 = sld [smem:[#allocation11_spill]]  ;;  %s4613_s30 = sld [smem:[#allocation5_spill]] }
 0xe9a   : > { %p2909_p7 = scmp.ge.s32.totalorder %s4612_s29, 2  ;;  %s2379_s26 = sand.u32 1, %s4613_s30  }
 0xe9b   : > { %s2380_s23 = scalar_lea.sflag [#allocation3], %s2379_s26 }
 0xe9c   : > { %p2906_p9 = pnand %p2909_p7, %p3742_p8 }
 0xe9e   : > { %3434 = dma.done.wait (!%p2906_p9), %s2380_s23, 128  }
 0xe9f   : > { %3436 = vsyncadd (!%p2906_p9), %s2380_s23, 4294967168  ;;  %s31_s20 = sadd.s32 1, %s4612_s29   ;;  %s4615_s19 = sld [smem:[#allocation6_spill]] }
 0xea0   : > { %p28_p10 = scmp.ge.s32.totalorder %s31_s20, 6   ;;  %s4616_s29 = sld [smem:[#allocation16_spill]] }
 0xea1   : > { %s4617_s30 = sld [smem:[#allocation9_spill]]  ;;  %s4618_s0 = sld [smem:[#allocation10_spill]] }
 0xea2   : > { %s4619_s22 = sld [smem:[#allocation12_spill]]  ;;  %s4620_s1 = sld [smem:[#allocation14_spill]] }
 0xea3   : > { %s4621_s27 = smov %s3443_s28  ;;  %30 = sbr.rel (!%p28_p10) target bundleno = 15 (0xf), region = 182 }
 0xea5   : > { %s4622_s28 = smov %s4615_s19 }
 0xea8   : > { %s4623_s19 = smov %s4619_s22 }
 0xeaa   :  { %2385 = vsyncpa [#allocation3], 1 }
 0xeab   :  { %2387 = vsyncpa [#allocation3 + $0x1], 1 }

</bundles_post_ra>
